<compile_context>
chip_gen: v5e
topology: v5e:2x2
jax: 0.10.0
libtpu: 0.0.40
codegen_flags: <defaults>
</compile_context>

<pallas_src>
import functools

import jax
import jax.numpy as jnp
from jax.experimental import pallas as pl
from jax.experimental.pallas import tpu as pltpu


def _resblock_kernel(x_ref, w1_ref, w2_ref, alpha_ref, out_ref, pad_ref, *,
                     W, pad_off):
    # x_ref    : (C, H*W)   one NCHW image, spatial dims flattened (lane-dense)
    # w*_ref   : (9, C, C)  conv taps, [ky*3+kx, cout, cin]
    # alpha_ref: (1,) SMEM  PReLU slope
    # out_ref  : (C, H*W)
    # pad_ref  : (C, P + H*W + W + 1) VMEM scratch, row-padded flat activation
    C, HW = x_ref.shape
    f32 = jnp.float32
    cdt = pad_ref.dtype                       # MXU operand dtype (f32 or bf16)
    prec = jax.lax.Precision.HIGHEST if cdt == f32 else None
    P = pad_off                               # 128-aligned start of the data region
    L = pad_ref.shape[1]

    # Zero only the halo strips (head read by dy=-1 taps, tail by dy=+1 taps);
    # the interior is fully overwritten below.  Done every step so "parallel"
    # batch sharding across TensorCores stays correct.
    pad_ref[:, 0:P] = jnp.zeros((C, P), cdt)
    pad_ref[:, P + HW:L] = jnp.zeros((C, L - P - HW), cdt)

    # Column-validity masks for the horizontal taps (replace a physical W halo).
    col = jax.lax.broadcasted_iota(jnp.int32, (1, HW), 1) % W
    ok_xm1 = col != 0            # tap dx=-1 is invalid at x == 0
    ok_xp1 = col != (W - 1)      # tap dx=+1 is invalid at x == W-1

    def conv3x3(w_ref):
        acc = jnp.zeros((C, HW), f32)
        for k in range(9):                     # static unrolled 3x3 taps
            dy, dx = divmod(k, 3)
            start = P + (dy - 1) * W + (dx - 1)
            tap = pad_ref[:, start:start + HW]             # (Cin, HW), lane-dense
            if dx == 0:
                tap = jnp.where(ok_xm1, tap, 0)
            elif dx == 2:
                tap = jnp.where(ok_xp1, tap, 0)
            acc = acc + jnp.dot(w_ref[k], tap,             # (Cout,Cin)x(Cin,HW)
                                preferred_element_type=f32,
                                precision=prec)
        return acc                                          # f32 accumulator

    # --- conv1 + PReLU (PReLU / residual in f32; only MXU operands are `cdt`) ---
    pad_ref[:, P:P + HW] = x_ref[...].astype(cdt)
    y = conv3x3(w1_ref)
    a = alpha_ref[0]
    y = jnp.where(y > 0, y, a * y)

    # --- conv2 + residual (re-read x_ref; don't keep x live across both convs) ---
    pad_ref[:, P:P + HW] = y.astype(cdt)
    y = conv3x3(w2_ref)
    out_ref[...] = (y + x_ref[...].astype(f32)).astype(out_ref.dtype)


def resblock_forward(x_nchw, w1, w2, alpha, *, mxu_dtype=jnp.float32):
    """x_nchw: (N,C,H,W); w1,w2: (Cout,Cin,3,3) PyTorch OIHW; alpha: PReLU slope.

    mxu_dtype=jnp.bfloat16 gives bf16 MXU operands with f32 accumulation
    (production config); jnp.float32 keeps full precision for the 1e-4 check.
    """
    N, C, H, W = x_nchw.shape
    HW = H * W
    P = ((W + 1 + 127) // 128) * 128          # aligned halo offset (>= W+1)
    L = P + HW + W + 1                        # flat padded-activation length

    x_flat = x_nchw.reshape(N, C, HW)         # contiguous reshape: no HBM traffic
    # OIHW -> (ky*3+kx, cout, cin); cast the MXU operands once, outside the kernel.
    w1_t = jnp.transpose(w1, (2, 3, 0, 1)).reshape(9, C, C).astype(mxu_dtype)
    w2_t = jnp.transpose(w2, (2, 3, 0, 1)).reshape(9, C, C).astype(mxu_dtype)
    alpha_arr = jnp.asarray(alpha, jnp.float32).reshape(1)

    kernel = functools.partial(_resblock_kernel, W=W, pad_off=P)

    out = pl.pallas_call(
        kernel,
        out_shape=jax.ShapeDtypeStruct((N, C, HW), x_nchw.dtype),
        grid=(N,),
        in_specs=[
            pl.BlockSpec((None, C, HW), lambda n: (n, 0, 0)),       # image (lane=HW)
            pl.BlockSpec((9, C, C), lambda n: (0, 0, 0)),           # conv1 taps
            pl.BlockSpec((9, C, C), lambda n: (0, 0, 0)),           # conv2 taps
            pl.BlockSpec(memory_space=pltpu.MemorySpace.SMEM),      # PReLU alpha
        ],
        out_specs=pl.BlockSpec((None, C, HW), lambda n: (n, 0, 0)),
        scratch_shapes=[
            pltpu.VMEM((C, L), mxu_dtype),                          # padded activation
        ],
        compiler_params=pltpu.CompilerParams(
            dimension_semantics=("parallel",),                      # megacore on v7x
            vmem_limit_bytes=32 * 1024 * 1024,
        ),
    )(x_flat, w1_t, w2_t, alpha_arr)

    return out.reshape(N, C, H, W)                                  # still NCHW


def resblock_ref(x, w1, w2, alpha):
    """Pure-JAX reference matching PyTorch semantics (NCHW / OIHW)."""
    dn = jax.lax.conv_dimension_numbers(x.shape, w1.shape, ('NCHW', 'OIHW', 'NCHW'))
    conv = functools.partial(
        jax.lax.conv_general_dilated,
        window_strides=(1, 1), padding=((1, 1), (1, 1)),
        dimension_numbers=dn, precision=jax.lax.Precision.HIGHEST)
    y = conv(x, w1)
    y = jnp.where(y > 0, y, alpha * y)                              # PReLU (shared alpha)
    y = conv(y, w2)
    return y + x


if __name__ == "__main__":
    key = jax.random.PRNGKey(0)
    k1, k2, k3 = jax.random.split(key, 3)

    N, C, H, W = 2, 4, 16, 16
    x = jax.random.normal(k1, (N, C, H, W), jnp.float32)

    # Deterministic synthetic parameters (shapes from nn.Conv2d(dim, dim, 3) / nn.PReLU()).
    fan_in = C * 3 * 3
    w1 = jax.random.normal(k2, (C, C, 3, 3), jnp.float32) / jnp.sqrt(float(fan_in))
    w2 = jax.random.normal(k3, (C, C, 3, 3), jnp.float32) / jnp.sqrt(float(fan_in))
    alpha = jnp.float32(0.25)   # PyTorch PReLU default init value

    ref = resblock_ref(x, w1, w2, alpha)

    # f32 MXU path: bit-accurate enough for the strict check.
    out = jax.block_until_ready(resblock_forward(x, w1, w2, alpha,
                                                 mxu_dtype=jnp.float32))
    assert out.shape == x.shape and out.dtype == x.dtype
    if not bool(jnp.allclose(out, ref, atol=1e-4, rtol=1e-4)):
        raise SystemExit("resblock Pallas kernel (f32 MXU) mismatch vs reference")

    # bf16 MXU operands / f32 accumulation (production config): loose bf16 envelope.
    out_bf16 = jax.block_until_ready(resblock_forward(x, w1, w2, alpha,
                                                      mxu_dtype=jnp.bfloat16))
    assert out_bf16.shape == x.shape and out_bf16.dtype == x.dtype
    if not bool(jnp.allclose(out_bf16, ref, atol=1e-1, rtol=1e-1)):
        raise SystemExit("resblock Pallas kernel (bf16 MXU) mismatch vs reference")

    print("KERNEL_OK")
</pallas_src>

<mosaic_0001>
module attributes {stable_mosaic.version = 11 : i64} {
  func.func @_resblock_kernel(%arg0: i32, %arg1: memref<1x4x256xf32, #tpu.memory_space<vmem>>, %arg2: memref<9x4x4xf32, #tpu.memory_space<vmem>>, %arg3: memref<9x4x4xf32, #tpu.memory_space<vmem>>, %arg4: memref<1xf32, #tpu.memory_space<smem>>, %arg5: memref<1x4x256xf32, #tpu.memory_space<vmem>>, %arg6: memref<4x401xf32, #tpu.memory_space<vmem>>) attributes {dimension_semantics = [#tpu.dimension_semantics<parallel>], iteration_bounds = array<i64: 2>, scalar_prefetch = 0 : i64, scratch_operands = 1 : i64, tpu.core_type = #tpu.core_type<tc>, window_params = [{transform_indices = @transform_0, window_bounds = array<i64: 1, 4, 256>}, {pipeline_mode = #tpu.pipeline_mode<synchronous>, transform_indices = @transform_1, window_bounds = array<i64: 9, 4, 4>}, {pipeline_mode = #tpu.pipeline_mode<synchronous>, transform_indices = @transform_2, window_bounds = array<i64: 9, 4, 4>}, {transform_indices = @transform_3, window_bounds = array<i64: 1>}, {transform_indices = @transform_4, window_bounds = array<i64: 1, 4, 256>}]} {
    %cst = arith.constant 0.000000e+00 : f32
    %0 = vector.broadcast %cst : f32 to vector<4x128xf32>
    %c0 = arith.constant 0 : index
    %c0_0 = arith.constant 0 : index
    %1 = vector.load %arg6[%c0, %c0_0] : memref<4x401xf32, #tpu.memory_space<vmem>>, vector<4x128xf32>
    tpu.vector_store %arg6[%c0, %c0_0], %0 {strides = array<i32>} : memref<4x401xf32, #tpu.memory_space<vmem>>, vector<4x128xf32>,
    %cst_1 = arith.constant 0.000000e+00 : f32
    %2 = vector.broadcast %cst_1 : f32 to vector<4x17xf32>
    %c0_2 = arith.constant 0 : index
    %c384 = arith.constant 384 : index
    %3 = vector.load %arg6[%c0_2, %c384] : memref<4x401xf32, #tpu.memory_space<vmem>>, vector<4x17xf32>
    tpu.vector_store %arg6[%c0_2, %c384], %2 {strides = array<i32>} : memref<4x401xf32, #tpu.memory_space<vmem>>, vector<4x17xf32>,
    %4 = tpu.iota {dimensions = array<i32: 1>} : vector<1x256xi32>
    %c16_i32 = arith.constant 16 : i32
    %c0_i32 = arith.constant 0 : i32
    %5 = arith.cmpi eq, %c16_i32, %c0_i32 : i32
    %c1_i32 = arith.constant 1 : i32
    %6 = arith.select %5, %c1_i32, %c16_i32 : i32
    %7 = vector.broadcast %6 : i32 to vector<1x256xi32>
    %8 = arith.remsi %4, %7 : vector<1x256xi32>
    %c0_i32_3 = arith.constant 0 : i32
    %9 = vector.broadcast %c0_i32_3 : i32 to vector<1x256xi32>
    %10 = arith.cmpi ne, %8, %9 : vector<1x256xi32>
    %c0_i32_4 = arith.constant 0 : i32
    %11 = vector.broadcast %c0_i32_4 : i32 to vector<1x256xi32>
    %12 = arith.cmpi slt, %8, %11 : vector<1x256xi32>
    %c0_i32_5 = arith.constant 0 : i32
    %13 = arith.cmpi slt, %6, %c0_i32_5 : i32
    %14 = vector.broadcast %13 : i1 to vector<1x256xi1>
    %15 = vector.broadcast %14 : vector<1x256xi1> to vector<1x256xi1>
    %16 = arith.xori %12, %15 : vector<1x256xi1>
    %17 = arith.andi %16, %10 : vector<1x256xi1>
    %18 = vector.broadcast %6 : i32 to vector<1x256xi32>
    %19 = arith.addi %8, %18 : vector<1x256xi32>
    %20 = arith.select %17, %19, %8 : vector<1x256xi1>, vector<1x256xi32>
    %c0_i32_6 = arith.constant 0 : i32
    %21 = vector.broadcast %c0_i32_6 : i32 to vector<1x256xi32>
    %22 = arith.cmpi ne, %20, %21 : vector<1x256xi32>
    %c15_i32 = arith.constant 15 : i32
    %23 = vector.broadcast %c15_i32 : i32 to vector<1x256xi32>
    %24 = arith.cmpi ne, %20, %23 : vector<1x256xi32>
    %c0_7 = arith.constant 0 : index
    %c0_8 = arith.constant 0 : index
    %c0_9 = arith.constant 0 : index
    %25 = vector.load %arg1[%c0_7, %c0_8, %c0_9] : memref<1x4x256xf32, #tpu.memory_space<vmem>>, vector<1x4x256xf32>
    %26 = vector.shape_cast %25 : vector<1x4x256xf32> to vector<4x256xf32>
    %c0_10 = arith.constant 0 : index
    %c128 = arith.constant 128 : index
    %27 = vector.load %arg6[%c0_10, %c128] : memref<4x401xf32, #tpu.memory_space<vmem>>, vector<4x256xf32>
    tpu.vector_store %arg6[%c0_10, %c128], %26 {strides = array<i32>} : memref<4x401xf32, #tpu.memory_space<vmem>>, vector<4x256xf32>,
    %cst_11 = arith.constant 0.000000e+00 : f32
    %28 = vector.broadcast %cst_11 : f32 to vector<4x256xf32>
    %c0_12 = arith.constant 0 : index
    %c111 = arith.constant 111 : index
    %29 = vector.load %arg6[%c0_12, %c111] : memref<4x401xf32, #tpu.memory_space<vmem>>, vector<4x256xf32>
    %c0_i32_13 = arith.constant 0 : i32
    %30 = arith.sitofp %c0_i32_13 : i32 to f32
    %31 = vector.shape_cast %22 : vector<1x256xi1> to vector<1x256xi1>
    %32 = vector.broadcast %31 : vector<1x256xi1> to vector<4x256xi1>
    %33 = vector.broadcast %30 : f32 to vector<4x256xf32>
    %34 = arith.select %32, %29, %33 : vector<4x256xi1>, vector<4x256xf32>
    %c0_14 = arith.constant 0 : index
    %c0_15 = arith.constant 0 : index
    %c0_16 = arith.constant 0 : index
    %35 = vector.load %arg2[%c0_14, %c0_15, %c0_16] : memref<9x4x4xf32, #tpu.memory_space<vmem>>, vector<1x4x4xf32>
    %36 = vector.shape_cast %35 : vector<1x4x4xf32> to vector<4x4xf32>
    %cst_17 = arith.constant dense<0.000000e+00> : vector<4x256xf32>
    %37 = tpu.matmul %36, %34, %cst_17 {dimension_numbers = #tpu.dot_dimension_numbers<[1], [0], [0], [1], [0, 0, 1, 1], [], []>, precision = #tpu.contract_precision<fp32>} : vector<4x4xf32>, vector<4x256xf32>, vector<4x256xf32> -> vector<4x256xf32>
    %38 = arith.addf %28, %37 : vector<4x256xf32>
    %c0_18 = arith.constant 0 : index
    %c112 = arith.constant 112 : index
    %39 = vector.load %arg6[%c0_18, %c112] : memref<4x401xf32, #tpu.memory_space<vmem>>, vector<4x256xf32>
    %c1 = arith.constant 1 : index
    %c0_19 = arith.constant 0 : index
    %c0_20 = arith.constant 0 : index
    %40 = vector.load %arg2[%c1, %c0_19, %c0_20] : memref<9x4x4xf32, #tpu.memory_space<vmem>>, vector<1x4x4xf32>
    %41 = vector.shape_cast %40 : vector<1x4x4xf32> to vector<4x4xf32>
    %cst_21 = arith.constant dense<0.000000e+00> : vector<4x256xf32>
    %42 = tpu.matmul %41, %39, %cst_21 {dimension_numbers = #tpu.dot_dimension_numbers<[1], [0], [0], [1], [0, 0, 1, 1], [], []>, precision = #tpu.contract_precision<fp32>} : vector<4x4xf32>, vector<4x256xf32>, vector<4x256xf32> -> vector<4x256xf32>
    %43 = arith.addf %38, %42 : vector<4x256xf32>
    %c0_22 = arith.constant 0 : index
    %c113 = arith.constant 113 : index
    %44 = vector.load %arg6[%c0_22, %c113] : memref<4x401xf32, #tpu.memory_space<vmem>>, vector<4x256xf32>
    %c0_i32_23 = arith.constant 0 : i32
    %45 = arith.sitofp %c0_i32_23 : i32 to f32
    %46 = vector.shape_cast %24 : vector<1x256xi1> to vector<1x256xi1>
    %47 = vector.broadcast %46 : vector<1x256xi1> to vector<4x256xi1>
    %48 = vector.broadcast %45 : f32 to vector<4x256xf32>
    %49 = arith.select %47, %44, %48 : vector<4x256xi1>, vector<4x256xf32>
    %c2 = arith.constant 2 : index
    %c0_24 = arith.constant 0 : index
    %c0_25 = arith.constant 0 : index
    %50 = vector.load %arg2[%c2, %c0_24, %c0_25] : memref<9x4x4xf32, #tpu.memory_space<vmem>>, vector<1x4x4xf32>
    %51 = vector.shape_cast %50 : vector<1x4x4xf32> to vector<4x4xf32>
    %cst_26 = arith.constant dense<0.000000e+00> : vector<4x256xf32>
    %52 = tpu.matmul %51, %49, %cst_26 {dimension_numbers = #tpu.dot_dimension_numbers<[1], [0], [0], [1], [0, 0, 1, 1], [], []>, precision = #tpu.contract_precision<fp32>} : vector<4x4xf32>, vector<4x256xf32>, vector<4x256xf32> -> vector<4x256xf32>
    %53 = arith.addf %43, %52 : vector<4x256xf32>
    %c0_27 = arith.constant 0 : index
    %c127 = arith.constant 127 : index
    %54 = vector.load %arg6[%c0_27, %c127] : memref<4x401xf32, #tpu.memory_space<vmem>>, vector<4x256xf32>
    %c0_i32_28 = arith.constant 0 : i32
    %55 = arith.sitofp %c0_i32_28 : i32 to f32
    %56 = vector.shape_cast %22 : vector<1x256xi1> to vector<1x256xi1>
    %57 = vector.broadcast %56 : vector<1x256xi1> to vector<4x256xi1>
    %58 = vector.broadcast %55 : f32 to vector<4x256xf32>
    %59 = arith.select %57, %54, %58 : vector<4x256xi1>, vector<4x256xf32>
    %c3 = arith.constant 3 : index
    %c0_29 = arith.constant 0 : index
    %c0_30 = arith.constant 0 : index
    %60 = vector.load %arg2[%c3, %c0_29, %c0_30] : memref<9x4x4xf32, #tpu.memory_space<vmem>>, vector<1x4x4xf32>
    %61 = vector.shape_cast %60 : vector<1x4x4xf32> to vector<4x4xf32>
    %cst_31 = arith.constant dense<0.000000e+00> : vector<4x256xf32>
    %62 = tpu.matmul %61, %59, %cst_31 {dimension_numbers = #tpu.dot_dimension_numbers<[1], [0], [0], [1], [0, 0, 1, 1], [], []>, precision = #tpu.contract_precision<fp32>} : vector<4x4xf32>, vector<4x256xf32>, vector<4x256xf32> -> vector<4x256xf32>
    %63 = arith.addf %53, %62 : vector<4x256xf32>
    %c0_32 = arith.constant 0 : index
    %c128_33 = arith.constant 128 : index
    %64 = vector.load %arg6[%c0_32, %c128_33] : memref<4x401xf32, #tpu.memory_space<vmem>>, vector<4x256xf32>
    %c4 = arith.constant 4 : index
    %c0_34 = arith.constant 0 : index
    %c0_35 = arith.constant 0 : index
    %65 = vector.load %arg2[%c4, %c0_34, %c0_35] : memref<9x4x4xf32, #tpu.memory_space<vmem>>, vector<1x4x4xf32>
    %66 = vector.shape_cast %65 : vector<1x4x4xf32> to vector<4x4xf32>
    %cst_36 = arith.constant dense<0.000000e+00> : vector<4x256xf32>
    %67 = tpu.matmul %66, %64, %cst_36 {dimension_numbers = #tpu.dot_dimension_numbers<[1], [0], [0], [1], [0, 0, 1, 1], [], []>, precision = #tpu.contract_precision<fp32>} : vector<4x4xf32>, vector<4x256xf32>, vector<4x256xf32> -> vector<4x256xf32>
    %68 = arith.addf %63, %67 : vector<4x256xf32>
    %c0_37 = arith.constant 0 : index
    %c129 = arith.constant 129 : index
    %69 = vector.load %arg6[%c0_37, %c129] : memref<4x401xf32, #tpu.memory_space<vmem>>, vector<4x256xf32>
    %c0_i32_38 = arith.constant 0 : i32
    %70 = arith.sitofp %c0_i32_38 : i32 to f32
    %71 = vector.shape_cast %24 : vector<1x256xi1> to vector<1x256xi1>
    %72 = vector.broadcast %71 : vector<1x256xi1> to vector<4x256xi1>
    %73 = vector.broadcast %70 : f32 to vector<4x256xf32>
    %74 = arith.select %72, %69, %73 : vector<4x256xi1>, vector<4x256xf32>
    %c5 = arith.constant 5 : index
    %c0_39 = arith.constant 0 : index
    %c0_40 = arith.constant 0 : index
    %75 = vector.load %arg2[%c5, %c0_39, %c0_40] : memref<9x4x4xf32, #tpu.memory_space<vmem>>, vector<1x4x4xf32>
    %76 = vector.shape_cast %75 : vector<1x4x4xf32> to vector<4x4xf32>
    %cst_41 = arith.constant dense<0.000000e+00> : vector<4x256xf32>
    %77 = tpu.matmul %76, %74, %cst_41 {dimension_numbers = #tpu.dot_dimension_numbers<[1], [0], [0], [1], [0, 0, 1, 1], [], []>, precision = #tpu.contract_precision<fp32>} : vector<4x4xf32>, vector<4x256xf32>, vector<4x256xf32> -> vector<4x256xf32>
    %78 = arith.addf %68, %77 : vector<4x256xf32>
    %c0_42 = arith.constant 0 : index
    %c143 = arith.constant 143 : index
    %79 = vector.load %arg6[%c0_42, %c143] : memref<4x401xf32, #tpu.memory_space<vmem>>, vector<4x256xf32>
    %c0_i32_43 = arith.constant 0 : i32
    %80 = arith.sitofp %c0_i32_43 : i32 to f32
    %81 = vector.shape_cast %22 : vector<1x256xi1> to vector<1x256xi1>
    %82 = vector.broadcast %81 : vector<1x256xi1> to vector<4x256xi1>
    %83 = vector.broadcast %80 : f32 to vector<4x256xf32>
    %84 = arith.select %82, %79, %83 : vector<4x256xi1>, vector<4x256xf32>
    %c6 = arith.constant 6 : index
    %c0_44 = arith.constant 0 : index
    %c0_45 = arith.constant 0 : index
    %85 = vector.load %arg2[%c6, %c0_44, %c0_45] : memref<9x4x4xf32, #tpu.memory_space<vmem>>, vector<1x4x4xf32>
    %86 = vector.shape_cast %85 : vector<1x4x4xf32> to vector<4x4xf32>
    %cst_46 = arith.constant dense<0.000000e+00> : vector<4x256xf32>
    %87 = tpu.matmul %86, %84, %cst_46 {dimension_numbers = #tpu.dot_dimension_numbers<[1], [0], [0], [1], [0, 0, 1, 1], [], []>, precision = #tpu.contract_precision<fp32>} : vector<4x4xf32>, vector<4x256xf32>, vector<4x256xf32> -> vector<4x256xf32>
    %88 = arith.addf %78, %87 : vector<4x256xf32>
    %c0_47 = arith.constant 0 : index
    %c144 = arith.constant 144 : index
    %89 = vector.load %arg6[%c0_47, %c144] : memref<4x401xf32, #tpu.memory_space<vmem>>, vector<4x256xf32>
    %c7 = arith.constant 7 : index
    %c0_48 = arith.constant 0 : index
    %c0_49 = arith.constant 0 : index
    %90 = vector.load %arg2[%c7, %c0_48, %c0_49] : memref<9x4x4xf32, #tpu.memory_space<vmem>>, vector<1x4x4xf32>
    %91 = vector.shape_cast %90 : vector<1x4x4xf32> to vector<4x4xf32>
    %cst_50 = arith.constant dense<0.000000e+00> : vector<4x256xf32>
    %92 = tpu.matmul %91, %89, %cst_50 {dimension_numbers = #tpu.dot_dimension_numbers<[1], [0], [0], [1], [0, 0, 1, 1], [], []>, precision = #tpu.contract_precision<fp32>} : vector<4x4xf32>, vector<4x256xf32>, vector<4x256xf32> -> vector<4x256xf32>
    %93 = arith.addf %88, %92 : vector<4x256xf32>
    %c0_51 = arith.constant 0 : index
    %c145 = arith.constant 145 : index
    %94 = vector.load %arg6[%c0_51, %c145] : memref<4x401xf32, #tpu.memory_space<vmem>>, vector<4x256xf32>
    %c0_i32_52 = arith.constant 0 : i32
    %95 = arith.sitofp %c0_i32_52 : i32 to f32
    %96 = vector.shape_cast %24 : vector<1x256xi1> to vector<1x256xi1>
    %97 = vector.broadcast %96 : vector<1x256xi1> to vector<4x256xi1>
    %98 = vector.broadcast %95 : f32 to vector<4x256xf32>
    %99 = arith.select %97, %94, %98 : vector<4x256xi1>, vector<4x256xf32>
    %c8 = arith.constant 8 : index
    %c0_53 = arith.constant 0 : index
    %c0_54 = arith.constant 0 : index
    %100 = vector.load %arg2[%c8, %c0_53, %c0_54] : memref<9x4x4xf32, #tpu.memory_space<vmem>>, vector<1x4x4xf32>
    %101 = vector.shape_cast %100 : vector<1x4x4xf32> to vector<4x4xf32>
    %cst_55 = arith.constant dense<0.000000e+00> : vector<4x256xf32>
    %102 = tpu.matmul %101, %99, %cst_55 {dimension_numbers = #tpu.dot_dimension_numbers<[1], [0], [0], [1], [0, 0, 1, 1], [], []>, precision = #tpu.contract_precision<fp32>} : vector<4x4xf32>, vector<4x256xf32>, vector<4x256xf32> -> vector<4x256xf32>
    %103 = arith.addf %93, %102 : vector<4x256xf32>
    %c0_56 = arith.constant 0 : index
    %104 = memref.load %arg4[%c0_56] : memref<1xf32, #tpu.memory_space<smem>>
    %cst_57 = arith.constant 0.000000e+00 : f32
    %105 = vector.broadcast %cst_57 : f32 to vector<4x256xf32>
    %106 = arith.cmpf ogt, %103, %105 : vector<4x256xf32>
    %107 = vector.broadcast %104 : f32 to vector<4x256xf32>
    %108 = arith.mulf %107, %103 : vector<4x256xf32>
    %109 = arith.select %106, %103, %108 : vector<4x256xi1>, vector<4x256xf32>
    %c0_58 = arith.constant 0 : index
    %c128_59 = arith.constant 128 : index
    %110 = vector.load %arg6[%c0_58, %c128_59] : memref<4x401xf32, #tpu.memory_space<vmem>>, vector<4x256xf32>
    tpu.vector_store %arg6[%c0_58, %c128_59], %109 {strides = array<i32>} : memref<4x401xf32, #tpu.memory_space<vmem>>, vector<4x256xf32>,
    %cst_60 = arith.constant 0.000000e+00 : f32
    %111 = vector.broadcast %cst_60 : f32 to vector<4x256xf32>
    %c0_61 = arith.constant 0 : index
    %c111_62 = arith.constant 111 : index
    %112 = vector.load %arg6[%c0_61, %c111_62] : memref<4x401xf32, #tpu.memory_space<vmem>>, vector<4x256xf32>
    %c0_i32_63 = arith.constant 0 : i32
    %113 = arith.sitofp %c0_i32_63 : i32 to f32
    %114 = vector.shape_cast %22 : vector<1x256xi1> to vector<1x256xi1>
    %115 = vector.broadcast %114 : vector<1x256xi1> to vector<4x256xi1>
    %116 = vector.broadcast %113 : f32 to vector<4x256xf32>
    %117 = arith.select %115, %112, %116 : vector<4x256xi1>, vector<4x256xf32>
    %c0_64 = arith.constant 0 : index
    %c0_65 = arith.constant 0 : index
    %c0_66 = arith.constant 0 : index
    %118 = vector.load %arg3[%c0_64, %c0_65, %c0_66] : memref<9x4x4xf32, #tpu.memory_space<vmem>>, vector<1x4x4xf32>
    %119 = vector.shape_cast %118 : vector<1x4x4xf32> to vector<4x4xf32>
    %cst_67 = arith.constant dense<0.000000e+00> : vector<4x256xf32>
    %120 = tpu.matmul %119, %117, %cst_67 {dimension_numbers = #tpu.dot_dimension_numbers<[1], [0], [0], [1], [0, 0, 1, 1], [], []>, precision = #tpu.contract_precision<fp32>} : vector<4x4xf32>, vector<4x256xf32>, vector<4x256xf32> -> vector<4x256xf32>
    %121 = arith.addf %111, %120 : vector<4x256xf32>
    %c0_68 = arith.constant 0 : index
    %c112_69 = arith.constant 112 : index
    %122 = vector.load %arg6[%c0_68, %c112_69] : memref<4x401xf32, #tpu.memory_space<vmem>>, vector<4x256xf32>
    %c1_70 = arith.constant 1 : index
    %c0_71 = arith.constant 0 : index
    %c0_72 = arith.constant 0 : index
    %123 = vector.load %arg3[%c1_70, %c0_71, %c0_72] : memref<9x4x4xf32, #tpu.memory_space<vmem>>, vector<1x4x4xf32>
    %124 = vector.shape_cast %123 : vector<1x4x4xf32> to vector<4x4xf32>
    %cst_73 = arith.constant dense<0.000000e+00> : vector<4x256xf32>
    %125 = tpu.matmul %124, %122, %cst_73 {dimension_numbers = #tpu.dot_dimension_numbers<[1], [0], [0], [1], [0, 0, 1, 1], [], []>, precision = #tpu.contract_precision<fp32>} : vector<4x4xf32>, vector<4x256xf32>, vector<4x256xf32> -> vector<4x256xf32>
    %126 = arith.addf %121, %125 : vector<4x256xf32>
    %c0_74 = arith.constant 0 : index
    %c113_75 = arith.constant 113 : index
    %127 = vector.load %arg6[%c0_74, %c113_75] : memref<4x401xf32, #tpu.memory_space<vmem>>, vector<4x256xf32>
    %c0_i32_76 = arith.constant 0 : i32
    %128 = arith.sitofp %c0_i32_76 : i32 to f32
    %129 = vector.shape_cast %24 : vector<1x256xi1> to vector<1x256xi1>
    %130 = vector.broadcast %129 : vector<1x256xi1> to vector<4x256xi1>
    %131 = vector.broadcast %128 : f32 to vector<4x256xf32>
    %132 = arith.select %130, %127, %131 : vector<4x256xi1>, vector<4x256xf32>
    %c2_77 = arith.constant 2 : index
    %c0_78 = arith.constant 0 : index
    %c0_79 = arith.constant 0 : index
    %133 = vector.load %arg3[%c2_77, %c0_78, %c0_79] : memref<9x4x4xf32, #tpu.memory_space<vmem>>, vector<1x4x4xf32>
    %134 = vector.shape_cast %133 : vector<1x4x4xf32> to vector<4x4xf32>
    %cst_80 = arith.constant dense<0.000000e+00> : vector<4x256xf32>
    %135 = tpu.matmul %134, %132, %cst_80 {dimension_numbers = #tpu.dot_dimension_numbers<[1], [0], [0], [1], [0, 0, 1, 1], [], []>, precision = #tpu.contract_precision<fp32>} : vector<4x4xf32>, vector<4x256xf32>, vector<4x256xf32> -> vector<4x256xf32>
    %136 = arith.addf %126, %135 : vector<4x256xf32>
    %c0_81 = arith.constant 0 : index
    %c127_82 = arith.constant 127 : index
    %137 = vector.load %arg6[%c0_81, %c127_82] : memref<4x401xf32, #tpu.memory_space<vmem>>, vector<4x256xf32>
    %c0_i32_83 = arith.constant 0 : i32
    %138 = arith.sitofp %c0_i32_83 : i32 to f32
    %139 = vector.shape_cast %22 : vector<1x256xi1> to vector<1x256xi1>
    %140 = vector.broadcast %139 : vector<1x256xi1> to vector<4x256xi1>
    %141 = vector.broadcast %138 : f32 to vector<4x256xf32>
    %142 = arith.select %140, %137, %141 : vector<4x256xi1>, vector<4x256xf32>
    %c3_84 = arith.constant 3 : index
    %c0_85 = arith.constant 0 : index
    %c0_86 = arith.constant 0 : index
    %143 = vector.load %arg3[%c3_84, %c0_85, %c0_86] : memref<9x4x4xf32, #tpu.memory_space<vmem>>, vector<1x4x4xf32>
    %144 = vector.shape_cast %143 : vector<1x4x4xf32> to vector<4x4xf32>
    %cst_87 = arith.constant dense<0.000000e+00> : vector<4x256xf32>
    %145 = tpu.matmul %144, %142, %cst_87 {dimension_numbers = #tpu.dot_dimension_numbers<[1], [0], [0], [1], [0, 0, 1, 1], [], []>, precision = #tpu.contract_precision<fp32>} : vector<4x4xf32>, vector<4x256xf32>, vector<4x256xf32> -> vector<4x256xf32>
    %146 = arith.addf %136, %145 : vector<4x256xf32>
    %c0_88 = arith.constant 0 : index
    %c128_89 = arith.constant 128 : index
    %147 = vector.load %arg6[%c0_88, %c128_89] : memref<4x401xf32, #tpu.memory_space<vmem>>, vector<4x256xf32>
    %c4_90 = arith.constant 4 : index
    %c0_91 = arith.constant 0 : index
    %c0_92 = arith.constant 0 : index
    %148 = vector.load %arg3[%c4_90, %c0_91, %c0_92] : memref<9x4x4xf32, #tpu.memory_space<vmem>>, vector<1x4x4xf32>
    %149 = vector.shape_cast %148 : vector<1x4x4xf32> to vector<4x4xf32>
    %cst_93 = arith.constant dense<0.000000e+00> : vector<4x256xf32>
    %150 = tpu.matmul %149, %147, %cst_93 {dimension_numbers = #tpu.dot_dimension_numbers<[1], [0], [0], [1], [0, 0, 1, 1], [], []>, precision = #tpu.contract_precision<fp32>} : vector<4x4xf32>, vector<4x256xf32>, vector<4x256xf32> -> vector<4x256xf32>
    %151 = arith.addf %146, %150 : vector<4x256xf32>
    %c0_94 = arith.constant 0 : index
    %c129_95 = arith.constant 129 : index
    %152 = vector.load %arg6[%c0_94, %c129_95] : memref<4x401xf32, #tpu.memory_space<vmem>>, vector<4x256xf32>
    %c0_i32_96 = arith.constant 0 : i32
    %153 = arith.sitofp %c0_i32_96 : i32 to f32
    %154 = vector.shape_cast %24 : vector<1x256xi1> to vector<1x256xi1>
    %155 = vector.broadcast %154 : vector<1x256xi1> to vector<4x256xi1>
    %156 = vector.broadcast %153 : f32 to vector<4x256xf32>
    %157 = arith.select %155, %152, %156 : vector<4x256xi1>, vector<4x256xf32>
    %c5_97 = arith.constant 5 : index
    %c0_98 = arith.constant 0 : index
    %c0_99 = arith.constant 0 : index
    %158 = vector.load %arg3[%c5_97, %c0_98, %c0_99] : memref<9x4x4xf32, #tpu.memory_space<vmem>>, vector<1x4x4xf32>
    %159 = vector.shape_cast %158 : vector<1x4x4xf32> to vector<4x4xf32>
    %cst_100 = arith.constant dense<0.000000e+00> : vector<4x256xf32>
    %160 = tpu.matmul %159, %157, %cst_100 {dimension_numbers = #tpu.dot_dimension_numbers<[1], [0], [0], [1], [0, 0, 1, 1], [], []>, precision = #tpu.contract_precision<fp32>} : vector<4x4xf32>, vector<4x256xf32>, vector<4x256xf32> -> vector<4x256xf32>
    %161 = arith.addf %151, %160 : vector<4x256xf32>
    %c0_101 = arith.constant 0 : index
    %c143_102 = arith.constant 143 : index
    %162 = vector.load %arg6[%c0_101, %c143_102] : memref<4x401xf32, #tpu.memory_space<vmem>>, vector<4x256xf32>
    %c0_i32_103 = arith.constant 0 : i32
    %163 = arith.sitofp %c0_i32_103 : i32 to f32
    %164 = vector.shape_cast %22 : vector<1x256xi1> to vector<1x256xi1>
    %165 = vector.broadcast %164 : vector<1x256xi1> to vector<4x256xi1>
    %166 = vector.broadcast %163 : f32 to vector<4x256xf32>
    %167 = arith.select %165, %162, %166 : vector<4x256xi1>, vector<4x256xf32>
    %c6_104 = arith.constant 6 : index
    %c0_105 = arith.constant 0 : index
    %c0_106 = arith.constant 0 : index
    %168 = vector.load %arg3[%c6_104, %c0_105, %c0_106] : memref<9x4x4xf32, #tpu.memory_space<vmem>>, vector<1x4x4xf32>
    %169 = vector.shape_cast %168 : vector<1x4x4xf32> to vector<4x4xf32>
    %cst_107 = arith.constant dense<0.000000e+00> : vector<4x256xf32>
    %170 = tpu.matmul %169, %167, %cst_107 {dimension_numbers = #tpu.dot_dimension_numbers<[1], [0], [0], [1], [0, 0, 1, 1], [], []>, precision = #tpu.contract_precision<fp32>} : vector<4x4xf32>, vector<4x256xf32>, vector<4x256xf32> -> vector<4x256xf32>
    %171 = arith.addf %161, %170 : vector<4x256xf32>
    %c0_108 = arith.constant 0 : index
    %c144_109 = arith.constant 144 : index
    %172 = vector.load %arg6[%c0_108, %c144_109] : memref<4x401xf32, #tpu.memory_space<vmem>>, vector<4x256xf32>
    %c7_110 = arith.constant 7 : index
    %c0_111 = arith.constant 0 : index
    %c0_112 = arith.constant 0 : index
    %173 = vector.load %arg3[%c7_110, %c0_111, %c0_112] : memref<9x4x4xf32, #tpu.memory_space<vmem>>, vector<1x4x4xf32>
    %174 = vector.shape_cast %173 : vector<1x4x4xf32> to vector<4x4xf32>
    %cst_113 = arith.constant dense<0.000000e+00> : vector<4x256xf32>
    %175 = tpu.matmul %174, %172, %cst_113 {dimension_numbers = #tpu.dot_dimension_numbers<[1], [0], [0], [1], [0, 0, 1, 1], [], []>, precision = #tpu.contract_precision<fp32>} : vector<4x4xf32>, vector<4x256xf32>, vector<4x256xf32> -> vector<4x256xf32>
    %176 = arith.addf %171, %175 : vector<4x256xf32>
    %c0_114 = arith.constant 0 : index
    %c145_115 = arith.constant 145 : index
    %177 = vector.load %arg6[%c0_114, %c145_115] : memref<4x401xf32, #tpu.memory_space<vmem>>, vector<4x256xf32>
    %c0_i32_116 = arith.constant 0 : i32
    %178 = arith.sitofp %c0_i32_116 : i32 to f32
    %179 = vector.shape_cast %24 : vector<1x256xi1> to vector<1x256xi1>
    %180 = vector.broadcast %179 : vector<1x256xi1> to vector<4x256xi1>
    %181 = vector.broadcast %178 : f32 to vector<4x256xf32>
    %182 = arith.select %180, %177, %181 : vector<4x256xi1>, vector<4x256xf32>
    %c8_117 = arith.constant 8 : index
    %c0_118 = arith.constant 0 : index
    %c0_119 = arith.constant 0 : index
    %183 = vector.load %arg3[%c8_117, %c0_118, %c0_119] : memref<9x4x4xf32, #tpu.memory_space<vmem>>, vector<1x4x4xf32>
    %184 = vector.shape_cast %183 : vector<1x4x4xf32> to vector<4x4xf32>
    %cst_120 = arith.constant dense<0.000000e+00> : vector<4x256xf32>
    %185 = tpu.matmul %184, %182, %cst_120 {dimension_numbers = #tpu.dot_dimension_numbers<[1], [0], [0], [1], [0, 0, 1, 1], [], []>, precision = #tpu.contract_precision<fp32>} : vector<4x4xf32>, vector<4x256xf32>, vector<4x256xf32> -> vector<4x256xf32>
    %186 = arith.addf %176, %185 : vector<4x256xf32>
    %c0_121 = arith.constant 0 : index
    %c0_122 = arith.constant 0 : index
    %c0_123 = arith.constant 0 : index
    %187 = vector.load %arg1[%c0_121, %c0_122, %c0_123] : memref<1x4x256xf32, #tpu.memory_space<vmem>>, vector<1x4x256xf32>
    %188 = vector.shape_cast %187 : vector<1x4x256xf32> to vector<4x256xf32>
    %189 = arith.addf %186, %188 : vector<4x256xf32>
    %c0_124 = arith.constant 0 : index
    %c0_125 = arith.constant 0 : index
    %c0_126 = arith.constant 0 : index
    %190 = vector.load %arg5[%c0_124, %c0_125, %c0_126] : memref<1x4x256xf32, #tpu.memory_space<vmem>>, vector<1x4x256xf32>
    %191 = vector.shape_cast %190 : vector<1x4x256xf32> to vector<4x256xf32>
    %192 = vector.shape_cast %189 : vector<4x256xf32> to vector<1x4x256xf32>
    tpu.vector_store %arg5[%c0_124, %c0_125, %c0_126], %192 {strides = array<i32>} : memref<1x4x256xf32, #tpu.memory_space<vmem>>, vector<1x4x256xf32>,
    return
  }
  func.func @transform_0(%arg0: i32) -> (i32, i32, i32) {
    %c0_i32 = arith.constant 0 : i32
    %c0_i32_0 = arith.constant 0 : i32
    %c0_i32_1 = arith.constant 0 : i32
    return %arg0, %c0_i32, %c0_i32_0 : i32, i32, i32
  }
  func.func @transform_1(%arg0: i32) -> (i32, i32, i32) {
    %c0_i32 = arith.constant 0 : i32
    %c0_i32_0 = arith.constant 0 : i32
    %c0_i32_1 = arith.constant 0 : i32
    %c0_i32_2 = arith.constant 0 : i32
    return %c0_i32, %c0_i32_0, %c0_i32_1 : i32, i32, i32
  }
  func.func @transform_2(%arg0: i32) -> (i32, i32, i32) {
    %c0_i32 = arith.constant 0 : i32
    %c0_i32_0 = arith.constant 0 : i32
    %c0_i32_1 = arith.constant 0 : i32
    %c0_i32_2 = arith.constant 0 : i32
    return %c0_i32, %c0_i32_0, %c0_i32_1 : i32, i32, i32
  }
  func.func @transform_3(%arg0: i32) -> i32 {
    %c0_i32 = arith.constant 0 : i32
    %c0_i32_0 = arith.constant 0 : i32
    return %c0_i32 : i32
  }
  func.func @transform_4(%arg0: i32) -> (i32, i32, i32) {
    %c0_i32 = arith.constant 0 : i32
    %c0_i32_0 = arith.constant 0 : i32
    %c0_i32_1 = arith.constant 0 : i32
    return %arg0, %c0_i32, %c0_i32_0 : i32, i32, i32
  }
}

</mosaic_0001>

<bundles_post_ra>
// kernel: tpu_custom_call.1
= control target key start
LH: loop header
LB: loop body
LE: loop exit
PB: predicated region body
PF: predicated region fallthrough
CT: control target
= control target key end

     0   :  { %s7435_s0 = inlined_call_operand.vmem [shape: f32[2,4,256], index: 0, kind: input, shape index: {}]   ;;  %s7436_s1 = inlined_call_operand.vmem [shape: f32[9,4,4], index: 1, kind: input, shape index: {}]   ;;  %s7437_s2 = inlined_call_operand.vmem [shape: f32[9,4,4], index: 2, kind: input, shape index: {}]   ;;  %s7438_s3 = inlined_call_operand.<no memory space> [shape: f32[1], index: 3, kind: input, shape index: {}]   ;;  %s7439_s4 = inlined_call_operand.hbm [shape: f32[2,4,256], index: 4, kind: output, shape index: {}]  }
   0x1   :  { %9 = sst [smem:[#allocation3]] %s7438_s3 }
   0x2   :  { %10 = vsyncpa [#allocation5], 0 }
   0x3   :  { %12 = vsyncpa [#allocation5 + $0x1], 0  ;;  %s6349_s17 = smov 0   ;;  %s6351_s18 = smov 0  }
   0x4   :  { %s6353_s19 = smov 0   ;;  %s6355_s20 = smov 0  }
   0x5 LB: > { %s6370_s3 = sadd.s32 4294967295, %s6310_s20   ;;  %s6170_s21 = sadd.s32 4294967294, %s6310_s20   ;;  %s6310_s20 = sphi %s6355_s20, %s7526_s20   ;;  %s6306_s19 = sphi %s6353_s19, %s7525_s19   ;;  %s6302_s18 = sphi %s6351_s18, %s7524_s18   ;;  %s6298_s17 = sphi %s6349_s17, %s7523_s17  }
   0x6   : > { %s6374_s22 = sadd.s32 1, %s6310_s20   ;;  %s114_s23 = sadd.s32 1, %s6306_s19 }
   0x7   : > { %s111_s24 = ssub.s32 %s6310_s20, %s6374_s22  ;;  %p124_p0 = scmp.ne.s32.totalorder %s6306_s19, %s6302_s18 }
   0x8   : > { %p112_p1 = scmp.eq.s32.totalorder %s111_s24, 0  ;;  %p125_p2 = scmp.eq.s32.totalorder %s6370_s3, 1 }
   0x9   : > { %p130_p3 = scmp.ne.s32.totalorder %s6302_s18, %s6298_s17  ;;  %p131_p4 = scmp.eq.s32.totalorder %s6170_s21, 1 }
   0xa   : > { %s6385_s25 = scalar_select %p112_p1, %s6306_s19, %s114_s23  }
   0xb   : > { %p6387_p5 = por %p125_p2, %p124_p0  ;;  %p6391_p6 = por %p131_p4, %p130_p3 }
   0xc   : > { %p6173_p7 = scmp.ge.s32.totalorder %s6310_s20, 1  ;;  %p166_p8 = scmp.lt.s32.totalorder %s6310_s20, 3 }
   0xe   : > { %p167_p9 = pnand %p6173_p7, %p166_p8 }
  0x10   : > { %170 = sbr.rel (%p167_p9) target bundleno = 1039 (0x40f), region = 36 }
  0x15   : > { %p192_p10 = scmp.lt.s32.totalorder %s6370_s3, 1  ;;  %v6312_v0 = vmov 0.0   ;;  %s6313_s7 = smov 17   ;;  %vm198_vm0 = vcmask 134144   ;;  %v200_v23 = vlaneseq  ;;  %v6177_v24 = vld [vmem:[%s7436_s1 + $0x4] sm:$0xf] }
  0x16   : > { %197 = vst [vmem:[#allocation2] sm:$0xf] %v6312_v0  ;;  %s6314_s8 = smov 16   ;;  %s6315_s9 = smov 15   ;;  %vm282_vm1 = vcmask 31744   ;;  %vm253_vm2 = vcmask 138240  }
  0x17   : > { %s193_s28 = scalar_select %p192_p10, %s6370_s3, 1  ;;  %199 = vst.msk [vmem:[#allocation2 + $0xc] sm:$0xf] %vm198_vm0, %v6312_v0  ;;  %v284_v27 = vsel %vm282_vm1, %v6177_v24, 0  ;;  %v6430_v28 = vand.u32 127, %v200_v23  ;;  %v7452_v40 = vmov 0 }
  0x18   : > { %s6316_s10 = smov 1   ;;  %s6317_s11 = smov 127   ;;  %v6432_v31 = vand.u32 4294901760, %v284_v27  ;;  %vm279_vm4 = vcmask 130048   ;;  %vm286_vm5 = vcmask 1043456   ;;  %v7455_v46 = vmov 0 }
  0x19   : > { %s6198_s29 = sshll.u32 %s193_s28, 3  ;;  %s6318_s14 = smov 113   ;;  %v6438_v32 = vadd.s32 128, %v6430_v28  ;;  %v207_v42 = vand.u32 15, %v6430_v28  ;;  %v260_v60 = vld [vmem:[%s7436_s1] sm:$0xf] }
  0x1a   : > { %s196_s6 = scalar_lea.vmem %s7435_s0, %s6198_s29  ;;  %v6441_v33 = vsub.f32 %v284_v27, %v6432_v31  ;;  %vm904_vm7 = vcmask 121856   ;;  %s6319_s21 = smov 112   ;;  %vm1232_vm10 = vcmask 7168   ;;  %vm1868_vm11 = vcmask 1039360  }
  0x1b   : > { %v6402_v1 = vld [vmem:[%s196_s6] sm:$0xff]  ;;  %v214_v35 = vand.u32 15, %v6438_v32  ;;  %vm6462_vm6 = vcmp.ne.s32.totalorder %v207_v42, 0  ;;  %vm6509_vm8 = vcmp.ne.s32.totalorder %v207_v42, 15  ;;  %s6320_s28 = smov 111   ;;  %vm2196_vm12 = vcmask 924672  }
  0x1c   : > { %7451 = vst [vmem:[#allocation7_spill] sm:$0xff] %v6402_v1  ;;  %v6446_v39 = vand.u32 4294901760, %v6441_v33  ;;  %v7456_v46 = vsel %vm6462_vm6, 4294967295, %v7455_v46  ;;  %vm2526_vm13 = vcmask 916480   ;;  %vm2846_vm14 = vcmask 908288   ;;  %s3158_s5 = sld [smem:[#allocation3]] }
  0x1d   : > { %232 = vst [vmem:[#allocation2 + $0x4] sm:$0xff] %v6402_v1  ;;  %vm6450_vm3 = vcmp.ne.s32.totalorder %v214_v35, 0  ;;  %vm6516_vm9 = vcmp.ne.s32.totalorder %v214_v35, 15  ;;  %s6268_s23 = scalar_lea.hbm %s7439_s4, 16 }
  0x1e   : > { %v1853_v26 = vld [vmem:[#allocation2 + $0xc] sm:$0xf]  ;;  %v7453_v40 = vsel %vm6450_vm3, 4294967295, %v7452_v40  ;;  %v311_v43 = vsub.f32 %v6441_v33, %v6446_v39  ;;  %7457 = vst [vmem:[#allocation9_spill] sm:$0xff] %v7456_v46 }
  0x1f   : > { %7454 = vst [vmem:[#allocation8_spill] sm:$0xff] %v7453_v40  ;;  %v2181_v0 = vld [vmem:[#allocation2 + $0xc] sm:$0xf] }
  0x20   : > { %v312_v53 = vand.u32 4294901760, %v311_v43  ;;  %v6178_v43 = vld [vmem:[%s7436_s1 + $0x8] sm:$0xf] }
  0x24   : > { %v233_v2 = vld [vmem:[#allocation2] sm:$0xff]  ;;  %v234_v3 = vld [vmem:[#allocation2 + $0x8] sm:$0xf] }
  0x25   : > { %241 = vst [vmem:[#allocation1] ss:$2 sm:$0xff] %v233_v2  ;;  %v262_v4 = vld [vmem:[#allocation2 + $0x8] sm:$0xf] }
  0x26   : > { %243 = vst [vmem:[#allocation1 + $0x10] ss:$2 sm:$0xff] %v234_v3  ;;  %v885_v8 = vld [vmem:[#allocation2 + $0x8] sm:$0xf] }
  0x27   : > { %v1217_v12 = vld [vmem:[#allocation2 + $0x8] sm:$0xf] }
  0x2c   : > { %v244_v5 = vld.sshfl [vmem:[#allocation1] sm:$0xff pattern:$0x75316420]  ;;  %v245_v6 = vld.sshfl [vmem:[#allocation1 + $0x8] sm:$0xff pattern:$0x75316420] }
  0x2d   : > { %267 = vst [vmem:[#allocation1] ss:$2 sm:$0xff] %v233_v2  ;;  %v246_v7 = vld.sshfl [vmem:[#allocation1 + $0x10] sm:$0xff pattern:$0x75316420]  ;;  %249 = vrot.lane.b32.xlu2 %v245_v6, %s6313_s7 }
  0x2e   : > { %269 = vst [vmem:[#allocation1 + $0x10] ss:$2 sm:$0xff] %v262_v4 }
  0x34   : > { %v270_v9 = vld.sshfl [vmem:[#allocation1] sm:$0xff pattern:$0x75316420]  ;;  %v271_v10 = vld.sshfl [vmem:[#allocation1 + $0x8] sm:$0xff pattern:$0x75316420] }
  0x35   : > { %273 = vrot.lane.b32.xlu0 %v270_v9, %s6314_s8  ;;  %v272_v11 = vld.sshfl [vmem:[#allocation1 + $0x10] sm:$0xff pattern:$0x75316420]  ;;  %251 = vrot.lane.b32.xlu2 %v246_v7, %s6313_s7  ;;  %892 = vst [vmem:[#allocation1] ss:$2 sm:$0xff] %v233_v2 }
  0x36   : > { %277 = vrot.lane.b32.xlu1 %v272_v11, %s6314_s8  ;;  %894 = vst [vmem:[#allocation1 + $0x10] ss:$2 sm:$0xff] %v885_v8 }
  0x3c   : > { %v896_v13 = vld.sshfl [vmem:[#allocation1 + $0x8] sm:$0xff pattern:$0x75316420]  ;;  %v895_v14 = vld.sshfl [vmem:[#allocation1] sm:$0xff pattern:$0x75316420] }
  0x3d   : > { %275 = vrot.lane.b32.xlu0 %v271_v10, %s6314_s8  ;;  %v897_v15 = vld.sshfl [vmem:[#allocation1 + $0x10] sm:$0xff pattern:$0x75316420]  ;;  %1220 = vst [vmem:[#allocation1] ss:$2 sm:$0xff] %v233_v2 }
  0x3e   : > { %247 = vrot.lane.b32.xlu1 %v244_v5, %s6313_s7  ;;  %902 = vrot.lane.b32.xlu2 %v897_v15, %s6315_s9  ;;  %1222 = vst [vmem:[#allocation1 + $0x10] ss:$2 sm:$0xff] %v1217_v12  ;;  %v584_v5 = vsel %vm282_vm1, %v260_v60, 0 }
  0x3f   : > { %v6489_v9 = vand.u32 4294901760, %v584_v5 }
  0x44   : > { %v1224_v16 = vld.sshfl [vmem:[#allocation1 + $0x8] sm:$0xff pattern:$0x75316420]  ;;  %v1223_v17 = vld.sshfl [vmem:[#allocation1] sm:$0xff pattern:$0x75316420] }
  0x45   : > { %898 = vrot.lane.b32.xlu0 %v895_v14, %s6315_s9  ;;  %v1225_v18 = vld.sshfl [vmem:[#allocation1 + $0x10] sm:$0xff pattern:$0x75316420]  ;;  %1548 = vst [vmem:[#allocation1] ss:$2 sm:$0xff] %v6402_v1  ;;  %v6495_v14 = vsub.f32 %v584_v5, %v6489_v9 }
  0x46   : > { %900 = vrot.lane.b32.xlu1 %v896_v13, %s6315_s9  ;;  %1230 = vrot.lane.b32.xlu2 %v1225_v18, %s6316_s10  ;;  %1858 = vst [vmem:[#allocation1 + $0x10] ss:$2 sm:$0xff] %v1853_v26  ;;  %v7458_v26 = vmov 0 }
  0x47   : > { %v7459_v26 = vsel %vm6509_vm8, 4294967295, %v7458_v26 }
  0x48   : > { %7460 = vst [vmem:[#allocation10_spill] sm:$0xff] %v7459_v26 }
  0x4c   : > { %v6418_v19 = vld.sshfl [vmem:[#allocation1] sm:$0xff pattern:$0x75316420]  ;;  %v6420_v20 = vld.sshfl [vmem:[#allocation1 + $0x8] sm:$0xff pattern:$0x75316420] }
  0x4d   : > { %1226 = vrot.lane.b32.xlu0 %v1223_v17, %s6316_s10  ;;  %1856 = vst [vmem:[#allocation1] ss:$2 sm:$0xff] %v6402_v1  ;;  %v1861_v34 = vld.sshfl [vmem:[#allocation1 + $0x10] sm:$0xff pattern:$0x75316420] }
  0x4e   : > { %1228 = vrot.lane.b32.xlu1 %v1224_v16, %s6316_s10  ;;  %1866 = vrot.lane.b32.xlu2 %v1861_v34, %s6317_s11  ;;  %2186 = vst [vmem:[#allocation1 + $0x10] ss:$2 sm:$0xff] %v2181_v0 }
  0x54   : > { %v1860_v21 = vld.sshfl [vmem:[#allocation1 + $0x8] sm:$0xff pattern:$0x75316420]  ;;  %v1859_v22 = vld.sshfl [vmem:[#allocation1] sm:$0xff pattern:$0x75316420] }
  0x55   : > { %1862 = vrot.lane.b32.xlu0 %v1859_v22, %s6317_s11  ;;  %2184 = vst [vmem:[#allocation1] ss:$2 sm:$0xff] %v6402_v1  ;;  %v2189_v24 = vld.sshfl [vmem:[#allocation1 + $0x10] sm:$0xff pattern:$0x75316420] }
  0x56   : > { %1864 = vrot.lane.b32.xlu1 %v1860_v21, %s6317_s11  ;;  %2194 = vrot.lane.b32.xlu2 %v2189_v24, %s6318_s14 }
  0x5c   : > { %v2188_v29 = vld.sshfl [vmem:[#allocation1 + $0x8] sm:$0xff pattern:$0x75316420]  ;;  %v2187_v30 = vld.sshfl [vmem:[#allocation1] sm:$0xff pattern:$0x75316420] }
  0x5d   : > { %2190 = vrot.lane.b32.xlu0 %v2187_v30, %s6318_s14  ;;  %2514 = vst [vmem:[#allocation1] ss:$2 sm:$0xff] %v6402_v1  ;;  %v7461_v30 = vmov 0 }
  0x5e   : > { %2192 = vrot.lane.b32.xlu1 %v2188_v29, %s6318_s14  ;;  %v7462_v30 = vsel %vm6516_vm9, 4294967295, %v7461_v30 }
  0x5f   : > { %7463 = vst [vmem:[#allocation11_spill] sm:$0xff] %v7462_v30 }
  0x64   : > { %v2518_v18 = vld.sshfl [vmem:[#allocation1 + $0x8] sm:$0xff pattern:$0x75316420]  ;;  %v2517_v21 = vld.sshfl [vmem:[#allocation1] sm:$0xff pattern:$0x75316420] }
  0x65   : > { %2834 = vst [vmem:[#allocation1] ss:$2 sm:$0xff] %v6402_v1  ;;  %2520 = vrot.lane.b32.xlu0 %v2517_v21, %s6319_s21 }
  0x66   : > { %2522 = vrot.lane.b32.xlu1 %v2518_v18, %s6319_s21 }
  0x87   : > { %v250_v25 = vpop.permute.xlu2 %249 }
  0x8f   : > { %v252_v37 = vpop.permute.xlu2 %251 }
  0x90   : > { %v255_v41 = vsel %vm253_vm2, %v250_v25, %v252_v37 }
  0x91   : > { %v259_v44 = vsel %vm6450_vm3, %v255_v41, 0.0 }
  0x92   : > { %v590_v49 = vsel %vm286_vm5, %v259_v44, 0  ;;  %v914_v44 = vsel %vm282_vm1, %v6178_v43, 0 }
  0x93   : > { %v6474_v58 = vand.u32 4294901760, %v590_v49 }
  0x95   : > { %v6487_v6 = vsub.f32 %v590_v49, %v6474_v58  ;;  %v2837_v49 = vld.sshfl [vmem:[#allocation1] sm:$0xff pattern:$0x75316420] }
  0x96   : > { %2840 = vrot.lane.b32.xlu0 %v2837_v49, %s6320_s28 }
  0x97   : > { %v781_v13 = vand.u32 4294901760, %v6487_v6 }
  0x98   : > { %v903_v23 = vpop.permute.xlu2 %902 }
  0x99   : > { %v782_v22 = vsub.f32 %v6487_v6, %v781_v13 }
  0x9b   : > { %v783_v28 = vand.u32 4294901760, %v782_v22 }
  0xa0   : > { %v1231_v60 = vpop.permute.xlu2 %1230 }
  0xa7   : > { %v274_v36 = vpop.permute.xlu0 %273 }
  0xa8   : > { %v278_v38 = vpop.permute.xlu1 %277 }
  0xaf   : > { %v276_v45 = vpop.permute.xlu0 %275 }
  0xb0   : > { %v280_v47 = vsel %vm279_vm4, %v274_v36, %v276_v45  ;;  %v281_v48 = vsel %vm279_vm4, %v276_v45, %v278_v38  ;;  %v248_v50 = vpop.permute.xlu1 %247  ;;  %v2509_v45 = vld [vmem:[#allocation2 + $0xc] sm:$0xf] }
  0xb1   : > { %v287_v51 = vsel %vm286_vm5, %v280_v47, 0  ;;  %v289_v52 = vsel %vm286_vm5, %v281_v48, 0  ;;  %v254_v54 = vsel %vm253_vm2, %v248_v50, %v250_v25  ;;  %v6505_v25 = vand.u32 4294901760, %v6495_v14  ;;  %2516 = vst [vmem:[#allocation1 + $0x10] ss:$2 sm:$0xff] %v2509_v45 }
  0xb2   : > { %v306_v55 = vand.u32 4294901760, %v287_v51  ;;  %v452_v56 = vand.u32 4294901760, %v289_v52  ;;  %v258_v57 = vsel %vm6462_vm6, %v254_v54, 0.0  ;;  %v6557_v48 = vand.u32 4294901760, %v914_v44 }
  0xb3   : > { %v587_v59 = vsel %vm286_vm5, %v258_v57, 0  ;;  %v612_v32 = vsub.f32 %v6495_v14, %v6505_v25 }
  0xb4   : > { %v333_v61 = vsub.f32 %v287_v51, %v306_v55  ;;  %v479_v62 = vsub.f32 %v289_v52, %v452_v56  ;;  %307 = vmatpush.msra.mxu0 %v306_v55  ;;  %383 = vmatpush.msra.mxu3 %v306_v55  ;;  %v6480_v63 = vand.u32 4294901760, %v587_v59  ;;  %v2831_v52 = vld [vmem:[#allocation2 + $0xc] sm:$0xf] }
  0xb5   : > { %313 = vmatmul.f32.vlgmr.msra.gmra.mxu0 %v312_v53  ;;  %387 = vmatmul.f32.vlgmr.msra.gmra.mxu3 %v6446_v39 }
  0xb6   : > { %360 = vmatpush.msra.mxu2 %v333_v61  ;;  %v334_v2 = vand.u32 4294901760, %v333_v61  ;;  %v480_v3 = vand.u32 4294901760, %v479_v62  ;;  %v634_v4 = vsub.f32 %v587_v59, %v6480_v63 }
  0xb7   : > { %363 = vmatmul.f32.vlgmr.msra.gmra.mxu2 %v6441_v33  ;;  %v899_v17 = vpop.permute.xlu0 %898 }
  0xb8   : > { %453 = vmatpush.msrb.mxu2 %v452_v56  ;;  %409 = vmatpush.msrb.mxu0 %v334_v2  ;;  %v335_v7 = vsub.f32 %v333_v61, %v334_v2  ;;  %v481_v8 = vsub.f32 %v479_v62, %v480_v3  ;;  %v635_v12 = vand.u32 4294901760, %v634_v4  ;;  %v901_v16 = vpop.permute.xlu1 %900  ;;  %v2519_v57 = vld.sshfl [vmem:[#allocation1 + $0x10] sm:$0xff pattern:$0x75316420] }
  0xb9   : > { %v905_v27 = vsel %vm904_vm7, %v899_v17, %v901_v16  ;;  %v906_v34 = vsel %vm904_vm7, %v901_v16, %v903_v23  ;;  %2836 = vst [vmem:[#allocation1 + $0x10] ss:$2 sm:$0xff] %v2831_v52  ;;  %2524 = vrot.lane.b32.xlu2 %v2519_v57, %s6319_s21 }
  0xba   : > { %555 = vmatpush.msra.mxu2 %v480_v3  ;;  %506 = vmatpush.msra.mxu0 %v479_v62  ;;  %v336_v10 = vand.u32 4294901760, %v335_v7  ;;  %v482_v11 = vand.u32 4294901760, %v481_v8  ;;  %v636_v15 = vsub.f32 %v634_v4, %v635_v12  ;;  %v909_v36 = vsel %vm6509_vm8, %v905_v27, 0.0 }
  0xbb   : > { %v910_v35 = vsel %vm6516_vm9, %v906_v34, 0.0  ;;  %v917_v37 = vsel %vm286_vm5, %v909_v36, 0  ;;  %v1556_v34 = vsel %vm286_vm5, %v6420_v20, 0 }
  0xbc   : > { %337 = vmatpush.msra.mxu1 %v336_v10  ;;  %483 = vmatpush.msrb.mxu3 %v482_v11  ;;  %v637_v29 = vand.u32 4294901760, %v636_v15  ;;  %v920_v38 = vsel %vm286_vm5, %v910_v35, 0  ;;  %v6537_v41 = vand.u32 4294901760, %v917_v37  ;;  %v6179_v11 = vld [vmem:[%s7436_s1 + $0xc] sm:$0xf]  ;;  %v6627_v35 = vand.u32 4294901760, %v1556_v34 }
  0xbd   : > { %339 = vmatmul.f32.vlgmr.msra.gmra.mxu1 %v6432_v31  ;;  %411 = vmatmul.f32.vlgmr.msrb.gmra.mxu0 %v6432_v31  ;;  %v6539_v42 = vand.u32 4294901760, %v920_v38 }
  0xbe   : > { %431 = vmatpush.msrb.mxu1 %v306_v55  ;;  %485 = vmatmul.f32.vlgmr.msrb.gmra.mxu3 %v6432_v31  ;;  %v1746_v20 = vsub.f32 %v1556_v34, %v6627_v35 }
  0xbf   : > { %577 = vmatpush.msra.mxu3 %v452_v56  ;;  %459 = vmatmul.f32.vlgmr.msrb.gmra.mxu2 %v312_v53  ;;  %v6552_v47 = vsub.f32 %v920_v38, %v6539_v42  ;;  %v6565_v53 = vsub.f32 %v914_v44, %v6557_v48 }
  0xc0   : > { %529 = vmatpush.msra.mxu1 %v452_v56  ;;  %608 = vmatpush.msrb.mxu0 %v6480_v63  ;;  %v1229_v55 = vpop.permute.xlu1 %1228  ;;  %v1227_v56 = vpop.permute.xlu0 %1226 }
  0xc1   : > { %661 = vmatpush.msrb.mxu2 %v634_v4  ;;  %684 = vmatpush.msrb.mxu3 %v6480_v63  ;;  %v1111_v51 = vand.u32 4294901760, %v6552_v47  ;;  %v6574_v61 = vand.u32 4294901760, %v6565_v53 }
  0xc3   : > { %v1112_v59 = vsub.f32 %v6552_v47, %v1111_v51  ;;  %v942_v3 = vsub.f32 %v6565_v53, %v6574_v61 }
  0xc5   : > { %433 = vmatmul.f32.vlgmr.msrb.gmra.mxu1 %v6432_v31  ;;  %509 = vmatmul.f32.vlgmr.msra.gmra.mxu0 %v6441_v33  ;;  %v613_v33 = vand.u32 4294901760, %v612_v32  ;;  %v1113_v0 = vand.u32 4294901760, %v1112_v59  ;;  %v943_v7 = vand.u32 4294901760, %v942_v3  ;;  %v6180_v32 = vld [vmem:[%s7436_s1 + $0x10] sm:$0xf] }
  0xc6   : > { %579 = vmatmul.f32.vlgmr.msra.gmra.mxu3 %v6432_v31  ;;  %638 = vmatpush.msrb.mxu1 %v637_v29  ;;  %v1554_v29 = vsel %vm286_vm5, %v6418_v19, 0  ;;  %v1552_v19 = vsel %vm282_vm1, %v6180_v32, 0 }
  0xc7   : > { %710 = vmatpush.msra.mxu0 %v635_v12  ;;  %784 = vmatpush.msra.mxu3 %v783_v28  ;;  %v1242_v12 = vsel %vm282_vm1, %v6179_v11, 0  ;;  %v1573_v36 = vand.u32 4294901760, %v1554_v29  ;;  %v6634_v38 = vand.u32 4294901760, %v1552_v19 }
  0xc8   : > { %557 = vmatmul.f32.vlgmr.msra.gmra.mxu2 %v6432_v31  ;;  %v964_v31 = vsub.f32 %v917_v37, %v6537_v41  ;;  %v6604_v15 = vand.u32 4294901760, %v1242_v12  ;;  %v1863_v44 = vpop.permute.xlu0 %1862 }
  0xc9   : > { %754 = vmatpush.msra.mxu2 %v6474_v58  ;;  %v1600_v37 = vsub.f32 %v1554_v29, %v1573_v36 }
  0xca   : > { %v965_v50 = vand.u32 4294901760, %v964_v31  ;;  %v1268_v18 = vsub.f32 %v1242_v12, %v6604_v15 }
  0xcc   : > { %v966_v54 = vsub.f32 %v964_v31, %v965_v50  ;;  %v6612_v23 = vand.u32 4294901760, %v1268_v18 }
  0xcd   : > { %533 = vmatmul.f32.vlgmr.msra.gmra.mxu1 %v6446_v39  ;;  %614 = vmatmul.f32.vlgmr.msrb.gmra.mxu0 %v613_v33  ;;  %v2838_v39 = vld.sshfl [vmem:[#allocation1 + $0x8] sm:$0xff pattern:$0x75316420] }
  0xce   : > { %688 = vmatmul.f32.vlgmr.msrb.gmra.mxu3 %v6505_v25  ;;  %732 = vmatpush.msra.mxu1 %v6480_v63  ;;  %v967_v62 = vand.u32 4294901760, %v966_v54  ;;  %v1234_v63 = vsel %vm1232_vm10, %v1229_v55, %v1231_v60  ;;  %v1270_v27 = vsub.f32 %v1268_v18, %v6612_v23 }
  0xcf   : > { %807 = vmatpush.msrb.mxu0 %v6487_v6  ;;  %878 = vmatpush.msrb.mxu3 %v6474_v58  ;;  %v1238_v4 = vsel %vm6450_vm3, %v1234_v63, 0.0 }
  0xd0   : > { %664 = vmatmul.f32.vlgmr.msrb.gmra.mxu2 %v6495_v14  ;;  %2842 = vrot.lane.b32.xlu1 %v2838_v39, %s6320_s28  ;;  %v1248_v6 = vsel %vm286_vm5, %v1238_v4, 0  ;;  %v1271_v28 = vand.u32 4294901760, %v1270_v27 }
  0xd1   : > { %856 = vmatpush.msrb.mxu2 %v781_v13  ;;  %v6591_v10 = vand.u32 4294901760, %v1248_v6 }
  0xd3   : > { %v1438_v13 = vsub.f32 %v1248_v6, %v6591_v10 }
  0xd5   : > { %640 = vmatmul.f32.vlgmr.msrb.gmra.mxu1 %v6489_v9  ;;  %712 = vmatmul.f32.vlgmr.msra.gmra.mxu0 %v6489_v9  ;;  %v1439_v17 = vand.u32 4294901760, %v1438_v13 }
  0xd6   : > { %786 = vmatmul.f32.vlgmr.msra.gmra.mxu3 %v6489_v9  ;;  %830 = vmatpush.msrb.mxu1 %v6474_v58  ;;  %v1233_v58 = vsel %vm1232_vm10, %v1227_v56, %v1229_v55 }
  0xd7   : > { %938 = vmatpush.msra.mxu0 %v6537_v41  ;;  %1014 = vmatpush.msra.mxu3 %v6537_v41  ;;  %v1237_v2 = vsel %vm6462_vm6, %v1233_v58, 0.0  ;;  %v1440_v22 = vsub.f32 %v1438_v13, %v1439_v17 }
  0xd8   : > { %760 = vmatmul.f32.vlgmr.msra.gmra.mxu2 %v613_v33  ;;  %v1245_v5 = vsel %vm286_vm5, %v1237_v2, 0  ;;  %v1601_v33 = vand.u32 4294901760, %v1600_v37 }
  0xd9   : > { %991 = vmatpush.msra.mxu2 %v964_v31  ;;  %v1265_v8 = vand.u32 4294901760, %v1245_v5  ;;  %v1865_v31 = vpop.permute.xlu1 %1864 }
  0xda   : > { %v1602_v43 = vsub.f32 %v1600_v37, %v1601_v33 }
  0xdc   : > { %v1603_v49 = vand.u32 4294901760, %v1602_v43 }
  0xdd   : > { %734 = vmatmul.f32.vlgmr.msra.gmra.mxu1 %v6489_v9  ;;  %810 = vmatmul.f32.vlgmr.msrb.gmra.mxu0 %v6495_v14  ;;  %v2839_v14 = vld.sshfl [vmem:[#allocation1 + $0x10] sm:$0xff pattern:$0x75316420] }
  0xde   : > { %880 = vmatmul.f32.vlgmr.msrb.gmra.mxu3 %v6489_v9  ;;  %968 = vmatpush.msra.mxu1 %v967_v62 }
  0xdf   : > { %1040 = vmatpush.msrb.mxu0 %v965_v50  ;;  %1114 = vmatpush.msrb.mxu3 %v1113_v0 }
  0xe0   : > { %858 = vmatmul.f32.vlgmr.msrb.gmra.mxu2 %v6489_v9  ;;  %v1292_v9 = vsub.f32 %v1245_v5, %v1265_v8  ;;  %2844 = vrot.lane.b32.xlu2 %v2839_v14, %s6320_s28 }
  0xe1   : > { %1084 = vmatpush.msrb.mxu2 %v6539_v42  ;;  %v2193_v6 = vpop.permute.xlu1 %2192 }
  0xe2   : > { %v1293_v16 = vand.u32 4294901760, %v1292_v9 }
  0xe4   : > { %v1294_v21 = vsub.f32 %v1292_v9, %v1293_v16 }
  0xe5   : > { %834 = vmatmul.f32.vlgmr.msrb.gmra.mxu1 %v6505_v25  ;;  %944 = vmatmul.f32.vlgmr.msra.gmra.mxu0 %v943_v7  ;;  %v1441_v25 = vand.u32 4294901760, %v1440_v22 }
  0xe6   : > { %1018 = vmatmul.f32.vlgmr.msra.gmra.mxu3 %v6574_v61  ;;  %1062 = vmatpush.msrb.mxu1 %v6537_v41  ;;  %v1295_v24 = vand.u32 4294901760, %v1294_v21  ;;  %v1747_v41 = vand.u32 4294901760, %v1746_v20 }
  0xe7   : > { %1137 = vmatpush.msra.mxu0 %v6552_v47  ;;  %1208 = vmatpush.msra.mxu3 %v6539_v42  ;;  %v1867_v47 = vpop.permute.xlu2 %1866 }
  0xe8   : > { %994 = vmatmul.f32.vlgmr.msra.gmra.mxu2 %v6565_v53  ;;  %v1748_v45 = vsub.f32 %v1746_v20, %v1747_v41  ;;  %v1870_v50 = vsel %vm1868_vm11, %v1865_v31, %v1867_v47 }
  0xe9   : > { %1186 = vmatpush.msra.mxu2 %v1111_v51  ;;  %v1874_v54 = vsel %vm6516_vm9, %v1870_v50, 0.0 }
  0xea   : > { %v1749_v51 = vand.u32 4294901760, %v1748_v45  ;;  %v1884_v56 = vsel %vm286_vm5, %v1874_v54, 0 }
  0xeb   : > { %v6660_v60 = vand.u32 4294901760, %v1884_v56 }
  0xed   : > { %970 = vmatmul.f32.vlgmr.msra.gmra.mxu1 %v6557_v48  ;;  %1042 = vmatmul.f32.vlgmr.msrb.gmra.mxu0 %v6557_v48  ;;  %v2074_v63 = vsub.f32 %v1884_v56, %v6660_v60 }
  0xee   : > { %1116 = vmatmul.f32.vlgmr.msrb.gmra.mxu3 %v6557_v48  ;;  %1160 = vmatpush.msra.mxu1 %v6539_v42  ;;  %v6639_v42 = vsub.f32 %v1552_v19, %v6634_v38 }
  0xef   : > { %1266 = vmatpush.msrb.mxu0 %v1265_v8  ;;  %1342 = vmatpush.msrb.mxu3 %v1265_v8  ;;  %v2075_v3 = vand.u32 4294901760, %v2074_v63 }
  0xf0   : > { %1090 = vmatmul.f32.vlgmr.msrb.gmra.mxu2 %v943_v7  ;;  %v6644_v39 = vand.u32 4294901760, %v6639_v42  ;;  %v2191_v7 = vpop.permute.xlu0 %2190 }
  0xf1   : > { %1319 = vmatpush.msrb.mxu2 %v1292_v9  ;;  %v2197_v9 = vsel %vm2196_vm12, %v2191_v7, %v2193_v6 }
  0xf5   : > { %1064 = vmatmul.f32.vlgmr.msrb.gmra.mxu1 %v6557_v48  ;;  %1140 = vmatmul.f32.vlgmr.msra.gmra.mxu0 %v6565_v53  ;;  %v1578_v53 = vsub.f32 %v6639_v42, %v6644_v39 }
  0xf6   : > { %1210 = vmatmul.f32.vlgmr.msra.gmra.mxu3 %v6557_v48  ;;  %1296 = vmatpush.msrb.mxu1 %v1295_v24 }
  0xf7   : > { %1368 = vmatpush.msra.mxu0 %v1293_v16  ;;  %1442 = vmatpush.msra.mxu3 %v1441_v25  ;;  %v1579_v57 = vand.u32 4294901760, %v1578_v53  ;;  %v6182_v25 = vld [vmem:[%s7436_s1 + $0x18] sm:$0xf] }
  0xf8   : > { %1188 = vmatmul.f32.vlgmr.msra.gmra.mxu2 %v6557_v48  ;;  %v1869_v48 = vsel %vm1868_vm11, %v1863_v44, %v1865_v31  ;;  %v2206_v29 = vsel %vm282_vm1, %v6182_v25, 0  ;;  %v2521_v43 = vpop.permute.xlu0 %2520 }
  0xf9   : > { %1412 = vmatpush.msra.mxu2 %v6591_v10  ;;  %v1873_v52 = vsel %vm6509_vm8, %v1869_v48, 0.0 }
  0xfa   : > { %v1881_v55 = vsel %vm286_vm5, %v1873_v52, 0 }
  0xfb   : > { %v1901_v59 = vand.u32 4294901760, %v1881_v55 }
  0xfd   : > { %1164 = vmatmul.f32.vlgmr.msra.gmra.mxu1 %v6574_v61  ;;  %1272 = vmatmul.f32.vlgmr.msrb.gmra.mxu0 %v1271_v28  ;;  %v6181_v61 = vld [vmem:[%s7436_s1 + $0x14] sm:$0xf]  ;;  %v1928_v58 = vsub.f32 %v1881_v55, %v1901_v59 }
  0xfe   : > { %1346 = vmatmul.f32.vlgmr.msrb.gmra.mxu3 %v6612_v23  ;;  %1390 = vmatpush.msra.mxu1 %v1265_v8  ;;  %v1878_v62 = vsel %vm282_vm1, %v6181_v61, 0  ;;  %v2076_v8 = vsub.f32 %v2074_v63, %v2075_v3 }
  0xff   : > { %1465 = vmatpush.msrb.mxu0 %v1438_v13  ;;  %1536 = vmatpush.msrb.mxu3 %v6591_v10  ;;  %v6671_v0 = vand.u32 4294901760, %v1878_v62  ;;  %v1929_v2 = vand.u32 4294901760, %v1928_v58 }
 0x100   : > { %1322 = vmatmul.f32.vlgmr.msrb.gmra.mxu2 %v1268_v18  ;;  %v2077_v14 = vand.u32 4294901760, %v2076_v8 }
 0x101   : > { %1514 = vmatpush.msrb.mxu2 %v1439_v17  ;;  %v6676_v4 = vsub.f32 %v1878_v62, %v6671_v0  ;;  %v1930_v5 = vsub.f32 %v1928_v58, %v1929_v2 }
 0x103   : > { %v6681_v11 = vand.u32 4294901760, %v6676_v4  ;;  %v1931_v12 = vand.u32 4294901760, %v1930_v5 }
 0x105   : > { %1298 = vmatmul.f32.vlgmr.msrb.gmra.mxu1 %v6604_v15  ;;  %1370 = vmatmul.f32.vlgmr.msra.gmra.mxu0 %v6604_v15  ;;  %v1906_v16 = vsub.f32 %v6676_v4, %v6681_v11 }
 0x106   : > { %1444 = vmatmul.f32.vlgmr.msra.gmra.mxu3 %v6604_v15  ;;  %1488 = vmatpush.msrb.mxu1 %v6591_v10  ;;  %v2195_v10 = vpop.permute.xlu2 %2194 }
 0x107   : > { %1574 = vmatpush.msra.mxu0 %v1573_v36  ;;  %1650 = vmatpush.msra.mxu3 %v1573_v36  ;;  %v2198_v13 = vsel %vm2196_vm12, %v2193_v6, %v2195_v10  ;;  %v1907_v22 = vand.u32 4294901760, %v1906_v16 }
 0x108   : > { %1418 = vmatmul.f32.vlgmr.msra.gmra.mxu2 %v1271_v28  ;;  %v2202_v17 = vsel %vm6450_vm3, %v2198_v13, 0.0  ;;  %v6714_v28 = vand.u32 4294901760, %v2206_v29 }
 0x109   : > { %1627 = vmatpush.msra.mxu2 %v1600_v37  ;;  %v2212_v21 = vsel %vm286_vm5, %v2202_v17, 0 }
 0x10a   : > { %v6700_v24 = vand.u32 4294901760, %v2212_v21  ;;  %v6720_v19 = vsub.f32 %v2206_v29, %v6714_v28 }
 0x10c   : > { %v6711_v34 = vsub.f32 %v2212_v21, %v6700_v24  ;;  %v2841_v21 = vpop.permute.xlu0 %2840 }
 0x10d   : > { %1392 = vmatmul.f32.vlgmr.msra.gmra.mxu1 %v6604_v15  ;;  %1468 = vmatmul.f32.vlgmr.msrb.gmra.mxu0 %v1268_v18 }
 0x10e   : > { %1538 = vmatmul.f32.vlgmr.msrb.gmra.mxu3 %v6604_v15  ;;  %1604 = vmatpush.msra.mxu1 %v1603_v49 }
 0x10f   : > { %1676 = vmatpush.msrb.mxu0 %v1601_v33  ;;  %1750 = vmatpush.msrb.mxu3 %v1749_v51 }
 0x110   : > { %1516 = vmatmul.f32.vlgmr.msrb.gmra.mxu2 %v6604_v15  ;;  %v2201_v15 = vsel %vm6462_vm6, %v2197_v9, 0.0 }
 0x111   : > { %1720 = vmatpush.msrb.mxu2 %v6627_v35  ;;  %v2209_v18 = vsel %vm286_vm5, %v2201_v15, 0 }
 0x113   : > { %v2525_v33 = vpop.permute.xlu2 %2524 }
 0x115   : > { %1492 = vmatmul.f32.vlgmr.msrb.gmra.mxu1 %v6612_v23  ;;  %1580 = vmatmul.f32.vlgmr.msra.gmra.mxu0 %v1579_v57  ;;  %v6698_v23 = vand.u32 4294901760, %v2209_v18 }
 0x116   : > { %1654 = vmatmul.f32.vlgmr.msra.gmra.mxu3 %v6644_v39  ;;  %1698 = vmatpush.msrb.mxu1 %v1573_v36 }
 0x117   : > { %1773 = vmatpush.msra.mxu0 %v1746_v20  ;;  %1844 = vmatpush.msra.mxu3 %v6627_v35  ;;  %v2256_v27 = vsub.f32 %v2209_v18, %v6698_v23 }
 0x118   : > { %1630 = vmatmul.f32.vlgmr.msra.gmra.mxu2 %v6639_v42 }
 0x119   : > { %1822 = vmatpush.msra.mxu2 %v1747_v41  ;;  %v2257_v32 = vand.u32 4294901760, %v2256_v27  ;;  %v6728_v41 = vand.u32 4294901760, %v6720_v19 }
 0x11b   : > { %v2258_v37 = vsub.f32 %v2256_v27, %v2257_v32  ;;  %v2234_v51 = vsub.f32 %v6720_v19, %v6728_v41 }
 0x11d   : > { %1606 = vmatmul.f32.vlgmr.msra.gmra.mxu1 %v6634_v38  ;;  %1678 = vmatmul.f32.vlgmr.msrb.gmra.mxu0 %v6634_v38  ;;  %v2259_v45 = vand.u32 4294901760, %v2258_v37 }
 0x11e   : > { %1752 = vmatmul.f32.vlgmr.msrb.gmra.mxu3 %v6634_v38  ;;  %1796 = vmatpush.msra.mxu1 %v6627_v35  ;;  %v2403_v35 = vand.u32 4294901760, %v6711_v34 }
 0x11f   : > { %1902 = vmatpush.msrb.mxu0 %v1901_v59  ;;  %1978 = vmatpush.msrb.mxu3 %v1901_v59 }
 0x120   : > { %1726 = vmatmul.f32.vlgmr.msrb.gmra.mxu2 %v1579_v57  ;;  %v2404_v20 = vsub.f32 %v6711_v34, %v2403_v35 }
 0x121   : > { %1955 = vmatpush.msrb.mxu2 %v1928_v58 }
 0x122   : > { %v2405_v48 = vand.u32 4294901760, %v2404_v20 }
 0x125   : > { %1700 = vmatmul.f32.vlgmr.msrb.gmra.mxu1 %v6634_v38  ;;  %1776 = vmatmul.f32.vlgmr.msra.gmra.mxu0 %v6639_v42  ;;  %v2523_v42 = vpop.permute.xlu1 %2522 }
 0x126   : > { %1846 = vmatmul.f32.vlgmr.msra.gmra.mxu3 %v6634_v38  ;;  %1932 = vmatpush.msrb.mxu1 %v1931_v12  ;;  %v2527_v49 = vsel %vm2526_vm13, %v2521_v43, %v2523_v42  ;;  %v2528_v52 = vsel %vm2526_vm13, %v2523_v42, %v2525_v33 }
 0x127   : > { %2004 = vmatpush.msra.mxu0 %v1929_v2  ;;  %2078 = vmatpush.msra.mxu3 %v2077_v14  ;;  %v2532_v54 = vsel %vm286_vm5, %v2527_v49, 0  ;;  %v2534_v55 = vsel %vm286_vm5, %v2528_v52, 0 }
 0x128   : > { %1824 = vmatmul.f32.vlgmr.msra.gmra.mxu2 %v6634_v38  ;;  %v6745_v61 = vand.u32 4294901760, %v2532_v54 }
 0x129   : > { %2048 = vmatpush.msra.mxu2 %v6660_v60 }
 0x12d   : > { %1800 = vmatmul.f32.vlgmr.msra.gmra.mxu1 %v6644_v39  ;;  %1908 = vmatmul.f32.vlgmr.msrb.gmra.mxu0 %v1907_v22 }
 0x12e   : > { %1982 = vmatmul.f32.vlgmr.msrb.gmra.mxu3 %v6681_v11  ;;  %2026 = vmatpush.msra.mxu1 %v1901_v59  ;;  %v2235_v59 = vand.u32 4294901760, %v2234_v51 }
 0x12f   : > { %2101 = vmatpush.msrb.mxu0 %v2074_v63  ;;  %2172 = vmatpush.msrb.mxu3 %v6660_v60  ;;  %v6747_v63 = vand.u32 4294901760, %v2534_v55 }
 0x130   : > { %1958 = vmatmul.f32.vlgmr.msrb.gmra.mxu2 %v6676_v4 }
 0x131   : > { %2150 = vmatpush.msrb.mxu2 %v2075_v3  ;;  %v6760_v6 = vsub.f32 %v2534_v55, %v6747_v63 }
 0x132   : > { %v314_v36 = vpop.f32.mrf.mxu0 }
 0x133   : > { %v2725_v14 = vand.u32 4294901760, %v6760_v6 }
 0x135   : > { %1934 = vmatmul.f32.vlgmr.msrb.gmra.mxu1 %v6671_v0  ;;  %2006 = vmatmul.f32.vlgmr.msra.gmra.mxu0 %v6671_v0 }
 0x136   : > { %2080 = vmatmul.f32.vlgmr.msra.gmra.mxu3 %v6671_v0  ;;  %2124 = vmatpush.msrb.mxu1 %v6660_v60 }
 0x137   : > { %2230 = vmatpush.msra.mxu0 %v6698_v23  ;;  %2306 = vmatpush.msra.mxu3 %v6698_v23 }
 0x138   : > { %2054 = vmatmul.f32.vlgmr.msra.gmra.mxu2 %v1907_v22  ;;  %v388_v38 = vpop.f32.mrf.mxu3 }
 0x139   : > { %2283 = vmatpush.msra.mxu2 %v2256_v27 }
 0x13a   : > { %v340_v31 = vpop.f32.mrf.mxu1  ;;  %v364_v44 = vpop.f32.mrf.mxu2 }
 0x13b   : > { %v341_v47 = vadd.f32 %v340_v31, %v314_v36  ;;  %v412_v39 = vpop.f32.mrf.mxu0  ;;  %v2845_v25 = vpop.permute.xlu2 %2844 }
 0x13d   : > { %v365_v50 = vadd.f32 %v364_v44, %v341_v47  ;;  %2028 = vmatmul.f32.vlgmr.msra.gmra.mxu1 %v6671_v0  ;;  %2104 = vmatmul.f32.vlgmr.msrb.gmra.mxu0 %v6676_v4  ;;  %v2578_v4 = vsub.f32 %v2532_v54, %v6745_v61 }
 0x13e   : > { %2174 = vmatmul.f32.vlgmr.msrb.gmra.mxu3 %v6671_v0  ;;  %2260 = vmatpush.msra.mxu1 %v2259_v45 }
 0x13f   : > { %v389_v53 = vadd.f32 %v388_v38, %v365_v50  ;;  %2332 = vmatpush.msrb.mxu0 %v2257_v32  ;;  %2406 = vmatpush.msrb.mxu3 %v2405_v48 }
 0x140   : > { %2152 = vmatmul.f32.vlgmr.msrb.gmra.mxu2 %v6671_v0  ;;  %v6183_v0 = vld [vmem:[%s7436_s1 + $0x1c] sm:$0xf] }
 0x141   : > { %v6740_v56 = vadd.f32 %v412_v39, %v389_v53  ;;  %v486_v57 = vpop.f32.mrf.mxu3  ;;  %2376 = vmatpush.msrb.mxu2 %v6700_v24  ;;  %v2530_v5 = vsel %vm282_vm1, %v6183_v0, 0 }
 0x142   : > { %v6743_v60 = vpop.f32.mrf.mxu1  ;;  %v460_v58 = vpop.f32.mrf.mxu2  ;;  %v6763_v8 = vand.u32 4294901760, %v2530_v5 }
 0x143   : > { %v510_v62 = vpop.f32.mrf.mxu0  ;;  %v487_v2 = vadd.f32 %v486_v57, %v460_v58  ;;  %v2843_v18 = vpop.permute.xlu1 %2842 }
 0x144   : > { %v6771_v16 = vsub.f32 %v2530_v5, %v6763_v8  ;;  %v2848_v32 = vsel %vm2846_vm14, %v2843_v18, %v2845_v25 }
 0x145   : > { %2128 = vmatmul.f32.vlgmr.msrb.gmra.mxu1 %v6681_v11  ;;  %2236 = vmatmul.f32.vlgmr.msra.gmra.mxu0 %v2235_v59  ;;  %v511_v3 = vadd.f32 %v510_v62, %v487_v2  ;;  %v2579_v11 = vand.u32 4294901760, %v2578_v4  ;;  %v2852_v42 = vsel %vm6516_vm9, %v2848_v32, 0.0 }
 0x146   : > { %2310 = vmatmul.f32.vlgmr.msra.gmra.mxu3 %v6728_v41  ;;  %2354 = vmatpush.msrb.mxu1 %v6698_v23  ;;  %v2726_v23 = vsub.f32 %v6760_v6, %v2725_v14  ;;  %v6783_v29 = vand.u32 4294901760, %v6771_v16  ;;  %v2862_v31 = vsel %vm286_vm5, %v2852_v42, 0 }
 0x147   : > { %2429 = vmatpush.msra.mxu0 %v6711_v34  ;;  %2500 = vmatpush.msra.mxu3 %v6700_v24  ;;  %v2580_v17 = vsub.f32 %v2578_v4, %v2579_v11  ;;  %v6814_v49 = vand.u32 4294901760, %v2862_v31 }
 0x148   : > { %2286 = vmatmul.f32.vlgmr.msra.gmra.mxu2 %v6720_v19  ;;  %v2727_v20 = vand.u32 4294901760, %v2726_v23  ;;  %v2556_v33 = vsub.f32 %v6771_v16, %v6783_v29 }
 0x149   : > { %2478 = vmatpush.msra.mxu2 %v2403_v35  ;;  %v580_v7 = vpop.f32.mrf.mxu3  ;;  %v2581_v36 = vand.u32 4294901760, %v2580_v17  ;;  %v3052_v52 = vsub.f32 %v2862_v31, %v6814_v49 }
 0x14a   : > { %v534_v10 = vpop.f32.mrf.mxu1 }
 0x14b   : > { %v535_v9 = vadd.f32 %v534_v10, %v511_v3  ;;  %v558_v12 = vpop.f32.mrf.mxu2  ;;  %v6765_v13 = vpop.f32.mrf.mxu0 }
 0x14d   : > { %v559_v15 = vadd.f32 %v558_v12, %v535_v9  ;;  %2262 = vmatmul.f32.vlgmr.msra.gmra.mxu1 %v6714_v28  ;;  %2334 = vmatmul.f32.vlgmr.msrb.gmra.mxu0 %v6714_v28 }
 0x14e   : > { %2408 = vmatmul.f32.vlgmr.msrb.gmra.mxu3 %v6714_v28  ;;  %2452 = vmatpush.msra.mxu1 %v6700_v24  ;;  %v2847_v24 = vsel %vm2846_vm14, %v2841_v21, %v2843_v18 }
 0x14f   : > { %v6775_v22 = vadd.f32 %v580_v7, %v559_v15  ;;  %2552 = vmatpush.msrb.mxu0 %v6745_v61  ;;  %2628 = vmatpush.msrb.mxu3 %v6745_v61  ;;  %v2851_v38 = vsel %vm6509_vm8, %v2847_v24, 0.0 }
 0x150   : > { %2382 = vmatmul.f32.vlgmr.msrb.gmra.mxu2 %v2235_v59  ;;  %v2859_v43 = vsel %vm286_vm5, %v2851_v38, 0 }
 0x151   : > { %v6780_v27 = vpop.f32.mrf.mxu3  ;;  %2605 = vmatpush.msrb.mxu2 %v2578_v4  ;;  %v2879_v47 = vand.u32 4294901760, %v2859_v43 }
 0x152   : > { %v6786_v34 = vpop.f32.mrf.mxu1 }
 0x153   : > { %v6789_v35 = vpop.f32.mrf.mxu2  ;;  %v6791_v37 = vpop.f32.mrf.mxu0  ;;  %v2906_v50 = vsub.f32 %v2859_v43, %v2879_v47 }
 0x155   : > { %2356 = vmatmul.f32.vlgmr.msrb.gmra.mxu1 %v6714_v28  ;;  %2432 = vmatmul.f32.vlgmr.msra.gmra.mxu0 %v6720_v19  ;;  %v2557_v19 = vand.u32 4294901760, %v2556_v33  ;;  %v2907_v55 = vand.u32 4294901760, %v2906_v50 }
 0x156   : > { %2502 = vmatmul.f32.vlgmr.msra.gmra.mxu3 %v6714_v28  ;;  %2582 = vmatpush.msrb.mxu1 %v2581_v36 }
 0x157   : > { %2654 = vmatpush.msra.mxu0 %v2579_v11  ;;  %2728 = vmatpush.msra.mxu3 %v2727_v20  ;;  %v2908_v62 = vsub.f32 %v2906_v50, %v2907_v55 }
 0x158   : > { %2480 = vmatmul.f32.vlgmr.msra.gmra.mxu2 %v6714_v28  ;;  %v6184_v28 = vld [vmem:[%s7436_s1 + $0x20] sm:$0xf] }
 0x159   : > { %v6805_v44 = vpop.f32.mrf.mxu3  ;;  %2698 = vmatpush.msra.mxu2 %v6747_v63  ;;  %v2856_v51 = vsel %vm282_vm1, %v6184_v28, 0  ;;  %v2909_v5 = vand.u32 4294901760, %v2908_v62 }
 0x15a   : > { %v6808_v45 = vpop.f32.mrf.mxu1 }
 0x15b   : > { %7464 = vst [vmem:[#allocation12_spill] sm:$0xff] %v6808_v45  ;;  %v6810_v39 = vpop.f32.mrf.mxu2  ;;  %v6812_v48 = vpop.f32.mrf.mxu0 }
 0x15d   : > { %2456 = vmatmul.f32.vlgmr.msra.gmra.mxu1 %v6728_v41  ;;  %2558 = vmatmul.f32.vlgmr.msrb.gmra.mxu0 %v2557_v19  ;;  %v2881_v41 = vand.u32 4294901760, %v2856_v51 }
 0x15e   : > { %2632 = vmatmul.f32.vlgmr.msrb.gmra.mxu3 %v6783_v29  ;;  %2676 = vmatpush.msra.mxu1 %v6745_v61  ;;  %v3053_v61 = vand.u32 4294901760, %v3052_v52 }
 0x15f   : > { %2751 = vmatpush.msrb.mxu0 %v6760_v6  ;;  %2822 = vmatpush.msrb.mxu3 %v6747_v63  ;;  %v2882_v58 = vsub.f32 %v2856_v51, %v2881_v41 }
 0x160   : > { %2608 = vmatmul.f32.vlgmr.msrb.gmra.mxu2 %v6771_v16  ;;  %v3054_v0 = vsub.f32 %v3052_v52, %v3053_v61 }
 0x161   : > { %2800 = vmatpush.msrb.mxu2 %v2725_v14  ;;  %v6827_v53 = vpop.f32.mrf.mxu3  ;;  %v2883_v3 = vand.u32 4294901760, %v2882_v58 }
 0x162   : > { %7465 = vst [vmem:[#allocation13_spill] sm:$0xff] %v6827_v53  ;;  %v6829_v54 = vpop.f32.mrf.mxu1  ;;  %v3055_v10 = vand.u32 4294901760, %v3054_v0 }
 0x163   : > { %v6831_v57 = vpop.f32.mrf.mxu2  ;;  %v6833_v59 = vpop.f32.mrf.mxu0 }
 0x164   : > { %7466 = vst [vmem:[#allocation14_spill] sm:$0xff] %v6831_v57 }
 0x165   : > { %2584 = vmatmul.f32.vlgmr.msrb.gmra.mxu1 %v6763_v8  ;;  %2656 = vmatmul.f32.vlgmr.msra.gmra.mxu0 %v6763_v8 }
 0x166   : > { %2730 = vmatmul.f32.vlgmr.msra.gmra.mxu3 %v6763_v8  ;;  %2774 = vmatpush.msrb.mxu1 %v6747_v63  ;;  %v2884_v63 = vsub.f32 %v2882_v58, %v2883_v3 }
 0x167   : > { %2880 = vmatpush.msra.mxu0 %v2879_v47  ;;  %2956 = vmatpush.msra.mxu3 %v2879_v47 }
 0x168   : > { %2704 = vmatmul.f32.vlgmr.msra.gmra.mxu2 %v2557_v19  ;;  %v2885_v9 = vand.u32 4294901760, %v2884_v63 }
 0x169   : > { %v6839_v2 = vpop.f32.mrf.mxu3  ;;  %2933 = vmatpush.msra.mxu2 %v2906_v50 }
 0x16a   : > { %v6841_v4 = vpop.f32.mrf.mxu1 }
 0x16b   : > { %v6843_v6 = vpop.f32.mrf.mxu2  ;;  %v6845_v7 = vpop.f32.mrf.mxu0 }
 0x16d   : > { %2678 = vmatmul.f32.vlgmr.msra.gmra.mxu1 %v6763_v8  ;;  %2754 = vmatmul.f32.vlgmr.msrb.gmra.mxu0 %v6771_v16 }
 0x16e   : > { %2824 = vmatmul.f32.vlgmr.msrb.gmra.mxu3 %v6763_v8  ;;  %2910 = vmatpush.msra.mxu1 %v2909_v5 }
 0x16f   : > { %2982 = vmatpush.msrb.mxu0 %v2907_v55  ;;  %3056 = vmatpush.msrb.mxu3 %v3055_v10 }
 0x170   : > { %2802 = vmatmul.f32.vlgmr.msrb.gmra.mxu2 %v6763_v8 }
 0x171   : > { %v6851_v11 = vpop.f32.mrf.mxu3  ;;  %3026 = vmatpush.msrb.mxu2 %v6814_v49 }
 0x172   : > { %v6854_v12 = vpop.f32.mrf.mxu1 }
 0x173   : > { %7467 = vst [vmem:[#allocation15_spill] sm:$0xff] %v6854_v12  ;;  %v6856_v14 = vpop.f32.mrf.mxu2  ;;  %v6858_v15 = vpop.f32.mrf.mxu0 }
 0x175   : > { %2778 = vmatmul.f32.vlgmr.msrb.gmra.mxu1 %v6783_v29  ;;  %2886 = vmatmul.f32.vlgmr.msra.gmra.mxu0 %v2885_v9 }
 0x176   : > { %2960 = vmatmul.f32.vlgmr.msra.gmra.mxu3 %v2883_v3  ;;  %3004 = vmatpush.msrb.mxu1 %v2879_v47 }
 0x177   : > { %3079 = vmatpush.msra.mxu0 %v3052_v52  ;;  %3150 = vmatpush.msra.mxu3 %v6814_v49 }
 0x178   : > { %2936 = vmatmul.f32.vlgmr.msra.gmra.mxu2 %v2882_v58 }
 0x179   : > { %3128 = vmatpush.msra.mxu2 %v3053_v61  ;;  %v6862_v8 = vpop.f32.mrf.mxu3 }
 0x17a   : > { %7468 = vst [vmem:[#allocation16_spill] sm:$0xff] %v6862_v8  ;;  %v6864_v16 = vpop.f32.mrf.mxu1 }
 0x17b   : > { %v6866_v17 = vpop.f32.mrf.mxu2  ;;  %v6868_v18 = vpop.f32.mrf.mxu0 }
 0x17d   : > { %2912 = vmatmul.f32.vlgmr.msra.gmra.mxu1 %v2881_v41  ;;  %2984 = vmatmul.f32.vlgmr.msrb.gmra.mxu0 %v2881_v41 }
 0x17e   : > { %3102 = vmatpush.msra.mxu1 %v6814_v49  ;;  %3058 = vmatmul.f32.vlgmr.msrb.gmra.mxu3 %v2881_v41 }
 0x180   : > { %3032 = vmatmul.f32.vlgmr.msrb.gmra.mxu2 %v2885_v9 }
 0x181   : > { %v6871_v21 = vpop.f32.mrf.mxu3 }
 0x182   : > { %v6873_v23 = vpop.f32.mrf.mxu1 }
 0x183   : > { %v6875_v25 = vpop.f32.mrf.mxu2  ;;  %v6877_v29 = vpop.f32.mrf.mxu0 }
 0x185   : > { %3006 = vmatmul.f32.vlgmr.msrb.gmra.mxu1 %v2881_v41  ;;  %3082 = vmatmul.f32.vlgmr.msra.gmra.mxu0 %v2882_v58 }
 0x186   : > { %3152 = vmatmul.f32.vlgmr.msra.gmra.mxu3 %v2881_v41 }
 0x188   : > { %3130 = vmatmul.f32.vlgmr.msra.gmra.mxu2 %v2881_v41 }
 0x189   : > { %v6879_v24 = vpop.f32.mrf.mxu3 }
 0x18a   : > { %v6881_v36 = vpop.f32.mrf.mxu1 }
 0x18b   : > { %7469 = vst [vmem:[#allocation17_spill] sm:$0xff] %v6881_v36  ;;  %v6883_v32 = vpop.f32.mrf.mxu2  ;;  %v6885_v20 = vpop.f32.mrf.mxu0 }
 0x18d   : > { %3106 = vmatmul.f32.vlgmr.msra.gmra.mxu1 %v2883_v3 }
 0x191   : > { %v6887_v38 = vpop.f32.mrf.mxu3 }
 0x192   : > { %7470 = vst [vmem:[#allocation18_spill] sm:$0xff] %v6887_v38  ;;  %v6889_v33 = vpop.f32.mrf.mxu1 }
 0x193   : > { %v6891_v42 = vpop.f32.mrf.mxu2  ;;  %v1581_v43 = vpop.f32.mrf.mxu0 }
 0x194   : > { %7471 = vst [vmem:[#allocation19_spill] sm:$0xff] %v6891_v42 }
 0x199   : > { %v6893_v31 = vpop.f32.mrf.mxu3 }
 0x19a   : > { %v1607_v19 = vpop.f32.mrf.mxu1 }
 0x19b   : > { %v6895_v47 = vpop.f32.mrf.mxu2  ;;  %v6897_v49 = vpop.f32.mrf.mxu0 }
 0x19c   : > { %7472 = vst [vmem:[#allocation20_spill] sm:$0xff] %v6897_v49 }
 0x1a1   : > { %v1753_v28 = vpop.f32.mrf.mxu3 }
 0x1a2   : > { %v6899_v50 = vpop.f32.mrf.mxu1 }
 0x1a3   : > { %7473 = vst [vmem:[#allocation21_spill] sm:$0xff] %v6899_v50  ;;  %v1727_v51 = vpop.f32.mrf.mxu2  ;;  %v6901_v52 = vpop.f32.mrf.mxu0 }
 0x1a9   : > { %v6903_v41 = vpop.f32.mrf.mxu3 }
 0x1aa   : > { %7474 = vst [vmem:[#allocation22_spill] sm:$0xff] %v6903_v41  ;;  %v6905_v55 = vpop.f32.mrf.mxu1 }
 0x1ab   : > { %v6907_v61 = vpop.f32.mrf.mxu2  ;;  %v1909_v58 = vpop.f32.mrf.mxu0 }
 0x1ac   : > { %7475 = vst [vmem:[#allocation23_spill] sm:$0xff] %v6907_v61 }
 0x1b1   : > { %v6909_v62 = vpop.f32.mrf.mxu3 }
 0x1b2   : > { %v1935_v0 = vpop.f32.mrf.mxu1 }
 0x1b3   : > { %v1959_v3 = vpop.f32.mrf.mxu2  ;;  %v6911_v5 = vpop.f32.mrf.mxu0 }
 0x1b4   : > { %7476 = vst [vmem:[#allocation24_spill] sm:$0xff] %v6911_v5 }
 0x1b9   : > { %v2081_v10 = vpop.f32.mrf.mxu3 }
 0x1ba   : > { %v6913_v63 = vpop.f32.mrf.mxu1 }
 0x1bb   : > { %7477 = vst [vmem:[#allocation25_spill] sm:$0xff] %v6913_v63  ;;  %v2055_v9 = vpop.f32.mrf.mxu2  ;;  %v6915_v30 = vpop.f32.mrf.mxu0 }
 0x1c1   : > { %v6917_v26 = vpop.f32.mrf.mxu3 }
 0x1c2   : > { %7478 = vst [vmem:[#allocation26_spill] sm:$0xff] %v6917_v26  ;;  %v6919_v46 = vpop.f32.mrf.mxu1 }
 0x1c3   : > { %7479 = vst [vmem:[#allocation27_spill] sm:$0xff] %v6919_v46  ;;  %v6921_v40 = vpop.f32.mrf.mxu2  ;;  %v2237_v1 = vpop.f32.mrf.mxu0 }
 0x1c4   : > { %7480 = vst [vmem:[#allocation28_spill] sm:$0xff] %v6921_v40 }
 0x1c9   : > { %v6923_v41 = vpop.f32.mrf.mxu3 }
 0x1ca   : > { %7481 = vst [vmem:[#allocation29_spill] sm:$0xff] %v6923_v41  ;;  %v2263_v50 = vpop.f32.mrf.mxu1 }
 0x1cb   : > { %v2287_v38 = vpop.f32.mrf.mxu2  ;;  %v6925_v53 = vpop.f32.mrf.mxu0 }
 0x1cc   : > { %7482 = vst [vmem:[#allocation30_spill] sm:$0xff] %v6925_v53  ;;  %v435_v53 = vadd.f32 %v6743_v60, %v6740_v56 }
 0x1d1   : > { %v2409_v5 = vpop.f32.mrf.mxu3 }
 0x1d2   : > { %v6927_v61 = vpop.f32.mrf.mxu1 }
 0x1d3   : > { %7483 = vst [vmem:[#allocation31_spill] sm:$0xff] %v6927_v61  ;;  %v2383_v63 = vpop.f32.mrf.mxu2  ;;  %v6929_v36 = vpop.f32.mrf.mxu0 }
 0x1d4   : > { %7484 = vst [vmem:[#allocation32_spill] sm:$0xff] %v6929_v36  ;;  %v616_v36 = vadd.f32 %v6765_v13, %v435_v53  ;;  %v1118_v53 = vadd.f32 %v6851_v11, %v6856_v14  ;;  %v1754_v14 = vadd.f32 %v1753_v28, %v1727_v51 }
 0x1d6   : > { %v1142_v11 = vadd.f32 %v6858_v15, %v1118_v53 }
 0x1d9   : > { %v6931_v8 = vpop.f32.mrf.mxu3 }
 0x1da   : > { %7485 = vst [vmem:[#allocation33_spill] sm:$0xff] %v6931_v8  ;;  %v6933_v26 = vpop.f32.mrf.mxu1 }
 0x1db   : > { %7486 = vst [vmem:[#allocation34_spill] sm:$0xff] %v6933_v26  ;;  %v6935_v45 = vpop.f32.mrf.mxu2  ;;  %v2559_v40 = vpop.f32.mrf.mxu0  ;;  %v762_v26 = vadd.f32 %v6810_v39, %v6775_v22 }
 0x1dc   : > { %7487 = vst [vmem:[#allocation35_spill] sm:$0xff] %v6935_v45  ;;  %v642_v45 = vadd.f32 %v6786_v34, %v616_v36  ;;  %v1166_v36 = vadd.f32 %v6864_v16, %v1142_v11 }
 0x1dd   : > { %v788_v34 = vadd.f32 %v6805_v44, %v762_v26  ;;  %v2264_v44 = vadd.f32 %v2263_v50, %v2237_v1  ;;  %v1778_v1 = vadd.f32 %v6901_v52, %v1754_v14  ;;  %v7505_v14 = vld [vmem:[#allocation13_spill] sm:$0xff] }
 0x1de   : > { %v666_v56 = vadd.f32 %v6789_v35, %v642_v45  ;;  %v1446_v35 = vadd.f32 %v6879_v24, %v6883_v32  ;;  %v2082_v24 = vadd.f32 %v2081_v10, %v2055_v9 }
 0x1df   : > { %v1802_v50 = vadd.f32 %v6905_v55, %v1778_v1  ;;  %v7497_v55 = vld [vmem:[#allocation32_spill] sm:$0xff] }
 0x1e0   : > { %v690_v45 = vadd.f32 %v6780_v27, %v666_v56 }
 0x1e1   : > { %v6937_v49 = vpop.f32.mrf.mxu3 }
 0x1e2   : > { %7488 = vst [vmem:[#allocation36_spill] sm:$0xff] %v6937_v49  ;;  %v2585_v41 = vpop.f32.mrf.mxu1  ;;  %v972_v49 = vadd.f32 %v6841_v4, %v6833_v59  ;;  %v1608_v59 = vadd.f32 %v1607_v19, %v1581_v43  ;;  %v714_v27 = vadd.f32 %v6791_v37, %v690_v45  ;;  %v1190_v37 = vadd.f32 %v6866_v17, %v1166_v36  ;;  %v7495_v17 = vld [vmem:[#allocation20_spill] sm:$0xff] }
 0x1e3   : > { %v2609_v46 = vpop.f32.mrf.mxu2  ;;  %v6939_v42 = vpop.f32.mrf.mxu0  ;;  %v2586_v43 = vadd.f32 %v2585_v41, %v2559_v40  ;;  %v7491_v41 = vld [vmem:[#allocation14_spill] sm:$0xff] }
 0x1e4   : > { %7489 = vst [vmem:[#allocation37_spill] sm:$0xff] %v6939_v42  ;;  %v1300_v42 = vadd.f32 %v6873_v23, %v6868_v18  ;;  %v996_v13 = vadd.f32 %v6843_v6, %v972_v49  ;;  %v1936_v18 = vadd.f32 %v1935_v0, %v1909_v58  ;;  %v812_v23 = vadd.f32 %v6812_v48, %v788_v34  ;;  %v7493_v0 = vld [vmem:[#allocation19_spill] sm:$0xff] }
 0x1e5   : > { %v1632_v26 = vadd.f32 %v6895_v47, %v1608_v59  ;;  %v2410_v49 = vadd.f32 %v2409_v5, %v2383_v63  ;;  %v2610_v51 = vadd.f32 %v2609_v46, %v2586_v43  ;;  %v7494_v5 = vld [vmem:[#allocation27_spill] sm:$0xff] }
 0x1e6   : > { %v1324_v39 = vadd.f32 %v6875_v25, %v1300_v42  ;;  %v1020_v6 = vadd.f32 %v6839_v2, %v996_v13  ;;  %v1470_v42 = vadd.f32 %v6885_v20, %v1446_v35  ;;  %v1960_v32 = vadd.f32 %v1959_v3, %v1936_v18  ;;  %v7498_v13 = vld [vmem:[#allocation12_spill] sm:$0xff]  ;;  %v7501_v34 = vld [vmem:[#allocation23_spill] sm:$0xff]  ;;  %v7503_v35 = vld [vmem:[#allocation34_spill] sm:$0xff] }
 0x1e7   : > { %v836_v15 = vadd.f32 %v6829_v54, %v812_v23  ;;  %v1656_v16 = vadd.f32 %v6893_v31, %v1632_v26  ;;  %v2106_v54 = vadd.f32 %v6915_v30, %v2082_v24  ;;  %v7492_v31 = vld [vmem:[#allocation15_spill] sm:$0xff]  ;;  %v2434_v56 = vadd.f32 %v7497_v55, %v2410_v49 }
 0x1e8   : > { %v1348_v25 = vadd.f32 %v6871_v21, %v1324_v39  ;;  %v1044_v19 = vadd.f32 %v6845_v7, %v1020_v6  ;;  %v1494_v48 = vadd.f32 %v6889_v33, %v1470_v42  ;;  %v2288_v21 = vadd.f32 %v2287_v38, %v2264_v44  ;;  %v7506_v44 = vld [vmem:[#allocation18_spill] sm:$0xff] }
 0x1e9   : > { %v2731_v61 = vpop.f32.mrf.mxu3  ;;  %v1984_v33 = vadd.f32 %v6909_v62, %v1960_v32  ;;  %v860_v58 = vadd.f32 %v7491_v41, %v836_v15  ;;  %v2130_v10 = vadd.f32 %v7494_v5, %v2106_v54  ;;  %v1680_v63 = vadd.f32 %v7495_v17, %v1656_v16  ;;  %v7499_v62 = vld [vmem:[#allocation16_spill] sm:$0xff]  ;;  %v7508_v32 = vld [vmem:[#allocation21_spill] sm:$0xff]  ;;  %v7509_v15 = vld [vmem:[#allocation30_spill] sm:$0xff] }
 0x1ea   : > { %v6943_v12 = vpop.f32.mrf.mxu1  ;;  %v1372_v40 = vadd.f32 %v6877_v29, %v1348_v25  ;;  %v1066_v38 = vadd.f32 %v7492_v31, %v1044_v19  ;;  %v1518_v3 = vadd.f32 %v7493_v0, %v1494_v48  ;;  %v7496_v29 = vld [vmem:[#allocation29_spill] sm:$0xff]  ;;  %v736_v53 = vadd.f32 %v7498_v13, %v714_v27  ;;  %v7504_v18 = vld [vmem:[#allocation36_spill] sm:$0xff] }
 0x1eb   : > { %7490 = vst [vmem:[#allocation38_spill] sm:$0xff] %v6943_v12  ;;  %v2705_v8 = vpop.f32.mrf.mxu2  ;;  %v6946_v57 = vpop.f32.mrf.mxu0  ;;  %v2312_v9 = vadd.f32 %v7496_v29, %v2288_v21  ;;  %v1212_v46 = vadd.f32 %v7499_v62, %v1190_v37  ;;  %v1826_v59 = vadd.f32 %v7501_v34, %v1802_v50  ;;  %v2458_v45 = vadd.f32 %v7503_v35, %v2434_v56  ;;  %v7507_v25 = vld [vmem:[#allocation28_spill] sm:$0xff]  ;;  %v7512_v37 = vld [vmem:[#allocation35_spill] sm:$0xff]  ;;  %v7513_v50 = vld [vmem:[#allocation37_spill] sm:$0xff] }
 0x1ec   : > { %v2732_v52 = vadd.f32 %v2731_v61, %v2705_v8  ;;  %v7500_v8 = vld [vmem:[#allocation17_spill] sm:$0xff]  ;;  %v2634_v6 = vadd.f32 %v7504_v18, %v2610_v51  ;;  %v882_v23 = vadd.f32 %v7505_v14, %v860_v58  ;;  %v1214_v26 = vadd.f32 %v1066_v38, %v736_v53  ;;  %v7515_v38 = vld [vmem:[#allocation31_spill] sm:$0xff] }
 0x1ed   : > { %v1394_v61 = vadd.f32 %v7500_v8, %v1372_v40  ;;  %v1540_v36 = vadd.f32 %v7506_v44, %v1518_v3  ;;  %v2154_v42 = vadd.f32 %v7507_v25, %v2130_v10  ;;  %v1702_v43 = vadd.f32 %v7508_v32, %v1680_v63  ;;  %v7516_v10 = vld [vmem:[#allocation33_spill] sm:$0xff] }
 0x1ee   : > { %v2756_v11 = vadd.f32 %v6946_v57, %v2732_v52  ;;  %v2336_v19 = vadd.f32 %v7509_v15, %v2312_v9  ;;  %v1215_v16 = vadd.f32 %v1212_v46, %v882_v23  ;;  %v7510_v57 = vld [vmem:[#allocation22_spill] sm:$0xff]  ;;  %v2482_v40 = vadd.f32 %v7512_v37, %v2458_v45 }
 0x1ef   : > { %v1542_v21 = vadd.f32 %v1394_v61, %v1214_v26  ;;  %v1848_v49 = vadd.f32 %v7510_v57, %v1826_v59  ;;  %v2658_v54 = vadd.f32 %v7513_v50, %v2634_v6  ;;  %v7514_v52 = vld [vmem:[#allocation26_spill] sm:$0xff]  ;;  %v4778_v57 = vld [vmem:[#allocation2 + $0xc] sm:$0xf] }
 0x1f0   : > { %v1543_v51 = vadd.f32 %v1540_v36, %v1215_v16  ;;  %v2176_v41 = vadd.f32 %v7514_v52, %v2154_v42  ;;  %v2504_v17 = vadd.f32 %v7516_v10, %v2482_v40  ;;  %v5432_v40 = vld [vmem:[#allocation2 + $0xc] sm:$0xf] }
 0x1f1   : > { %v6956_v60 = vpop.f32.mrf.mxu3  ;;  %v1850_v31 = vadd.f32 %v1702_v43, %v1542_v21 }
 0x1f2   : > { %v6961_v12 = vpop.f32.mrf.mxu1  ;;  %v1851_v3 = vadd.f32 %v1848_v49, %v1543_v51  ;;  %v7517_v63 = vld [vmem:[#allocation38_spill] sm:$0xff]  ;;  %v5753_v51 = vld [vmem:[#allocation2 + $0xc] sm:$0xf] }
 0x1f3   : > { %v6964_v4 = vpop.f32.mrf.mxu2  ;;  %v2887_v22 = vpop.f32.mrf.mxu0  ;;  %v2780_v48 = vadd.f32 %v6961_v12, %v2756_v11  ;;  %v2358_v12 = vadd.f32 %v7515_v38, %v2336_v19  ;;  %v2680_v29 = vadd.f32 %v7517_v63, %v2658_v54 }
 0x1f4   : > { %v2179_v55 = vadd.f32 %v2176_v41, %v1851_v3  ;;  %v7518_v3 = vld [vmem:[#allocation7_spill] sm:$0xff] }
 0x1f6   : > { %v2507_v61 = vadd.f32 %v2504_v17, %v2179_v55 }
 0x1f9   : > { %v2961_v2 = vpop.f32.mrf.mxu3 }
 0x1fa   : > { %v2913_v47 = vpop.f32.mrf.mxu1 }
 0x1fb   : > { %v2914_v20 = vadd.f32 %v2913_v47, %v2887_v22  ;;  %v2937_v28 = vpop.f32.mrf.mxu2  ;;  %v2985_v7 = vpop.f32.mrf.mxu0  ;;  %v7502_v22 = vld [vmem:[#allocation24_spill] sm:$0xff] }
 0x1fc   : > { %v2008_v39 = vadd.f32 %v7502_v22, %v1984_v33 }
 0x1fd   : > { %v2938_v30 = vadd.f32 %v2937_v28, %v2914_v20  ;;  %v7511_v20 = vld [vmem:[#allocation25_spill] sm:$0xff] }
 0x1fe   : > { %v2030_v28 = vadd.f32 %v7511_v20, %v2008_v39  ;;  %v3161_v39 = vstv %s3158_s5 }
 0x1ff   : > { %v2962_v1 = vadd.f32 %v2961_v2, %v2938_v30  ;;  %v2804_v2 = vadd.f32 %v6964_v4, %v2780_v48 }
 0x200   : > { %v2178_v5 = vadd.f32 %v2030_v28, %v1850_v31  ;;  %v5105_v28 = vld [vmem:[#allocation2 + $0xc] sm:$0xf] }
 0x201   : > { %v3059_v27 = vpop.f32.mrf.mxu3  ;;  %v2986_v0 = vadd.f32 %v2985_v7, %v2962_v1  ;;  %v2826_v13 = vadd.f32 %v6956_v60, %v2804_v2 }
 0x202   : > { %v3007_v24 = vpop.f32.mrf.mxu1  ;;  %v2506_v30 = vadd.f32 %v2358_v12, %v2178_v5  ;;  %v6185_v5 = vld [vmem:[%s7437_s2 + $0x4] sm:$0xf] }
 0x203   : > { %v3033_v47 = vpop.f32.mrf.mxu2  ;;  %v3083_v58 = vpop.f32.mrf.mxu0  ;;  %v3008_v53 = vadd.f32 %v3007_v24, %v2986_v0  ;;  %v2829_v34 = vadd.f32 %v2826_v13, %v2507_v61  ;;  %v3216_v10 = vsel %vm282_vm1, %v6185_v5, 0 }
 0x204   : > { %v3060_v33 = vadd.f32 %v3059_v27, %v3033_v47  ;;  %v2828_v4 = vadd.f32 %v2680_v29, %v2506_v30  ;;  %v7061_v17 = vand.u32 4294901760, %v3216_v10 }
 0x206   : > { %v3084_v9 = vadd.f32 %v3083_v58, %v3060_v33  ;;  %v3156_v59 = vadd.f32 %v3008_v53, %v2828_v4  ;;  %v7064_v63 = vsub.f32 %v3216_v10, %v7061_v17 }
 0x208   : > { %v3162_v45 = vmul.f32 %v3161_v39, %v3156_v59  ;;  %vm3159_vm0 = vcmp.gt.f32.partialorder %v3156_v59, 0.0  ;;  %v7067_v29 = vand.u32 4294901760, %v7064_v63 }
 0x209   : > { %v3153_v8 = vpop.f32.mrf.mxu3 }
 0x20a   : > { %v3107_v56 = vpop.f32.mrf.mxu1  ;;  %v3164_v14 = vsel %vm3159_vm0, %v3156_v59, %v3162_v45  ;;  %v3242_v55 = vsub.f32 %v7064_v63, %v7067_v29  ;;  %v3194_v59 = vld [vmem:[%s7437_s2] sm:$0xf] }
 0x20b   : > { %v3108_v62 = vadd.f32 %v3107_v56, %v3084_v9  ;;  %v3131_v46 = vpop.f32.mrf.mxu2 }
 0x20d   : > { %v3132_v7 = vadd.f32 %v3131_v46, %v3108_v62 }
 0x20f   : > { %v3154_v22 = vadd.f32 %v3153_v8, %v3132_v7  ;;  %v3243_v8 = vand.u32 4294901760, %v3242_v55 }
 0x211   : > { %v3157_v35 = vadd.f32 %v3154_v22, %v2829_v34 }
 0x213   : > { %vm3160_vm15 = vcmp.gt.f32.partialorder %v3157_v35, 0.0  ;;  %v3163_v18 = vmul.f32 %v3161_v39, %v3157_v35 }
 0x215   : > { %v3165_v6 = vsel %vm3160_vm15, %v3157_v35, %v3163_v18 }
 0x216   : > { %v3168_v11 = vrot.slane %v3165_v6, 4  ;;  %v3515_v6 = vsel %vm282_vm1, %v3194_v59, 0 }
 0x218   : > { %v7020_v60 = vsel %vm286_vm5, %v3164_v14, %v3168_v11 }
 0x219   : > { %3171 = vst [vmem:[#allocation2 + $0x4] sm:$0xff] %v7020_v60 }
 0x220   : > { %v3172_v23 = vld [vmem:[#allocation2] sm:$0xff]  ;;  %v3173_v26 = vld [vmem:[#allocation2 + $0x8] sm:$0xf] }
 0x221   : > { %3176 = vst [vmem:[#allocation1] ss:$2 sm:$0xff] %v3172_v23  ;;  %v3196_v44 = vld [vmem:[#allocation2 + $0x8] sm:$0xf] }
 0x222   : > { %3178 = vst [vmem:[#allocation1 + $0x10] ss:$2 sm:$0xff] %v3173_v26  ;;  %v3816_v24 = vld [vmem:[#allocation2 + $0x8] sm:$0xf] }
 0x223   : > { %v4143_v15 = vld [vmem:[#allocation2 + $0x8] sm:$0xf] }
 0x228   : > { %v3179_v36 = vld.sshfl [vmem:[#allocation1] sm:$0xff pattern:$0x75316420]  ;;  %v3180_v25 = vld.sshfl [vmem:[#allocation1 + $0x8] sm:$0xff pattern:$0x75316420] }
 0x229   : > { %v3181_v42 = vld.sshfl [vmem:[#allocation1 + $0x10] sm:$0xff pattern:$0x75316420]  ;;  %3201 = vst [vmem:[#allocation1] ss:$2 sm:$0xff] %v3172_v23 }
 0x22a   : > { %3203 = vst [vmem:[#allocation1 + $0x10] ss:$2 sm:$0xff] %v3196_v44 }
 0x230   : > { %v3205_v27 = vld.sshfl [vmem:[#allocation1 + $0x8] sm:$0xff pattern:$0x75316420]  ;;  %v3204_v32 = vld.sshfl [vmem:[#allocation1] sm:$0xff pattern:$0x75316420] }
 0x231   : > { %v3206_v43 = vld.sshfl [vmem:[#allocation1 + $0x10] sm:$0xff pattern:$0x75316420]  ;;  %3209 = vrot.lane.b32.xlu1 %v3205_v27, %s6314_s8  ;;  %3207 = vrot.lane.b32.xlu0 %v3204_v32, %s6314_s8  ;;  %3819 = vst [vmem:[#allocation1] ss:$2 sm:$0xff] %v3172_v23  ;;  %v7089_v32 = vand.u32 4294901760, %v3515_v6 }
 0x232   : > { %3211 = vrot.lane.b32.xlu2 %v3206_v43, %s6314_s8  ;;  %3821 = vst [vmem:[#allocation1 + $0x10] ss:$2 sm:$0xff] %v3816_v24 }
 0x238   : > { %v3823_v19 = vld.sshfl [vmem:[#allocation1 + $0x8] sm:$0xff pattern:$0x75316420]  ;;  %v3822_v48 = vld.sshfl [vmem:[#allocation1] sm:$0xff pattern:$0x75316420] }
 0x239   : > { %3184 = vrot.lane.b32.xlu1 %v3180_v25, %s6313_s7  ;;  %3182 = vrot.lane.b32.xlu0 %v3179_v36, %s6313_s7  ;;  %v3824_v1 = vld.sshfl [vmem:[#allocation1 + $0x10] sm:$0xff pattern:$0x75316420]  ;;  %4146 = vst [vmem:[#allocation1] ss:$2 sm:$0xff] %v3172_v23 }
 0x23a   : > { %3186 = vrot.lane.b32.xlu2 %v3181_v42, %s6313_s7  ;;  %4148 = vst [vmem:[#allocation1 + $0x10] ss:$2 sm:$0xff] %v4143_v15  ;;  %s189_s7 = sand.u32 1, %s6302_s18  }
 0x23b   : > { %s6174_s8 = sshll.u32 %s189_s7, 3 }
 0x240   : > { %v4150_v47 = vld.sshfl [vmem:[#allocation1 + $0x8] sm:$0xff pattern:$0x75316420]  ;;  %v4149_v16 = vld.sshfl [vmem:[#allocation1] sm:$0xff pattern:$0x75316420] }
 0x241   : > { %3827 = vrot.lane.b32.xlu1 %v3823_v19, %s6315_s9  ;;  %3825 = vrot.lane.b32.xlu0 %v3822_v48, %s6315_s9  ;;  %4473 = vst [vmem:[#allocation1] ss:$2 sm:$0xff] %v7020_v60  ;;  %v4151_v21 = vld.sshfl [vmem:[#allocation1 + $0x10] sm:$0xff pattern:$0x75316420] }
 0x242   : > { %3829 = vrot.lane.b32.xlu2 %v3824_v1, %s6315_s9  ;;  %4783 = vst [vmem:[#allocation1 + $0x10] ss:$2 sm:$0xff] %v4778_v57  ;;  %s6199_s9 = sshll.u32 %s6370_s3, 3  ;;  %s6095_s3 = scalar_lea.sflag [#allocation5], %s189_s7 }
 0x248   : > { %v7033_v49 = vld.sshfl [vmem:[#allocation1] sm:$0xff pattern:$0x75316420]  ;;  %v7035_v20 = vld.sshfl [vmem:[#allocation1 + $0x8] sm:$0xff pattern:$0x75316420] }
 0x249   : > { %4154 = vrot.lane.b32.xlu1 %v4150_v47, %s6316_s10  ;;  %4152 = vrot.lane.b32.xlu0 %v4149_v16, %s6316_s10  ;;  %4781 = vst [vmem:[#allocation1] ss:$2 sm:$0xff] %v7020_v60  ;;  %v4786_v37 = vld.sshfl [vmem:[#allocation1 + $0x10] sm:$0xff pattern:$0x75316420]  ;;  %v7094_v47 = vsub.f32 %v3515_v6, %v7089_v32 }
 0x24a   : > { %4156 = vrot.lane.b32.xlu2 %v4151_v21, %s6316_s10  ;;  %5110 = vst [vmem:[#allocation1 + $0x10] ss:$2 sm:$0xff] %v5105_v28 }
 0x250   : > { %v4785_v50 = vld.sshfl [vmem:[#allocation1 + $0x8] sm:$0xff pattern:$0x75316420]  ;;  %v4784_v54 = vld.sshfl [vmem:[#allocation1] sm:$0xff pattern:$0x75316420] }
 0x251   : > { %4789 = vrot.lane.b32.xlu1 %v4785_v50, %s6317_s11  ;;  %4787 = vrot.lane.b32.xlu0 %v4784_v54, %s6317_s11  ;;  %5108 = vst [vmem:[#allocation1] ss:$2 sm:$0xff] %v7020_v60  ;;  %v5113_v33 = vld.sshfl [vmem:[#allocation1 + $0x10] sm:$0xff pattern:$0x75316420]  ;;  %v7098_v50 = vand.u32 4294901760, %v7094_v47 }
 0x252   : > { %4791 = vrot.lane.b32.xlu2 %v4786_v37, %s6317_s11  ;;  %5439 = vst [vmem:[#allocation1 + $0x10] ss:$2 sm:$0xff] %v5432_v40 }
 0x258   : > { %v5112_v52 = vld.sshfl [vmem:[#allocation1 + $0x8] sm:$0xff pattern:$0x75316420]  ;;  %v5111_v41 = vld.sshfl [vmem:[#allocation1] sm:$0xff pattern:$0x75316420] }
 0x259   : > { %5116 = vrot.lane.b32.xlu1 %v5112_v52, %s6318_s14  ;;  %5114 = vrot.lane.b32.xlu0 %v5111_v41, %s6318_s14  ;;  %5437 = vst [vmem:[#allocation1] ss:$2 sm:$0xff] %v7020_v60  ;;  %v5442_v58 = vld.sshfl [vmem:[#allocation1 + $0x10] sm:$0xff pattern:$0x75316420] }
 0x25a   : > { %5118 = vrot.lane.b32.xlu2 %v5113_v33, %s6318_s14  ;;  %5758 = vst [vmem:[#allocation1 + $0x10] ss:$2 sm:$0xff] %v5753_v51  ;;  %s6106_s14 = scalar_lea.hbm %s7439_s4, %s6199_s9 }
 0x25b   : > { %s6110_s6 = sshll.u32 %s6106_s14, 4  ;;  %s6111_s6 = int_to_ptr.hbm [resolvable:$true] %s6110_s6 }
 0x25c   : > { %s6262_s12 = sshra.s32 %s6111_s6, 4  ;;  %s6263_s12 = int_to_ptr.hbm [resolvable:$true] %s6262_s12 }
 0x25d   : > { %s6264_s13 = scalar_lea.hbm %s6263_s12, 8  ;;  %p6269_p0 = scmp.lt.s32.totalorder %s6263_s12, %s7439_s4 }
 0x25e   : > { %p6265_p11 = scmp.ne.s32.totalorder %s6263_s12, %s6264_s13  ;;  %p6270_p1 = scmp.lt.s32.totalorder %s6268_s23, %s6264_s13 }
 0x260   : > { %v5441_v31 = vld.sshfl [vmem:[#allocation1 + $0x8] sm:$0xff pattern:$0x75316420]  ;;  %v5440_v38 = vld.sshfl [vmem:[#allocation1] sm:$0xff pattern:$0x75316420]  ;;  %p6266_p12 = pnand %p6265_p11, %p6387_p5  ;;  %p6271_p2 = por %p6270_p1, %p6269_p0 }
 0x261   : > { %5445 = vrot.lane.b32.xlu1 %v5441_v31, %s6319_s21  ;;  %5443 = vrot.lane.b32.xlu0 %v5440_v38, %s6319_s21  ;;  %5756 = vst [vmem:[#allocation1] ss:$2 sm:$0xff] %v7020_v60  ;;  %v5761_v12 = vld.sshfl [vmem:[#allocation1 + $0x10] sm:$0xff pattern:$0x75316420]  ;;  %v3543_v38 = vsub.f32 %v7094_v47, %v7098_v50 }
 0x262   : > { %5447 = vrot.lane.b32.xlu2 %v5442_v58, %s6319_s21  ;;  %s191_s21 = scalar_lea.vmem [#allocation4], %s6174_s8  ;;  %p6267_p13 = pneg %p6266_p12 }
 0x264   : > { %p6272_p3 = pnand %p6271_p2, %p6267_p13 }
 0x268   : > { %v5760_v2 = vld.sshfl [vmem:[#allocation1 + $0x8] sm:$0xff pattern:$0x75316420]  ;;  %v5759_v0 = vld.sshfl [vmem:[#allocation1] sm:$0xff pattern:$0x75316420] }
 0x269   : > { %5764 = vrot.lane.b32.xlu1 %v5760_v2, %s6320_s28  ;;  %5762 = vrot.lane.b32.xlu0 %v5759_v0, %s6320_s28  ;;  %6081 = vst [vmem:[#allocation1] ss:$2 sm:$0xff] %v7518_v3  ;;  %v3544_v3 = vand.u32 4294901760, %v3543_v38 }
 0x26a   : > { %5766 = vrot.lane.b32.xlu2 %v5761_v12, %s6320_s28  ;;  %s6108_s28 = sshll.u32 %s191_s21, 4  ;;  %s6109_s28 = int_to_ptr.vmem [resolvable:$true] %s6108_s28 }
 0x28c   : > { %v3212_v9 = vpop.permute.xlu2 %3211 }
 0x294   : > { %v3187_v22 = vpop.permute.xlu2 %3186 }
 0x29c   : > { %v3830_v51 = vpop.permute.xlu2 %3829 }
 0x2a3   : > { %v3210_v56 = vpop.permute.xlu1 %3209  ;;  %v3208_v30 = vpop.permute.xlu0 %3207 }
 0x2a4   : > { %v3214_v13 = vsel %vm279_vm4, %v3210_v56, %v3212_v9  ;;  %v3213_v53 = vsel %vm279_vm4, %v3208_v30, %v3210_v56 }
 0x2a5   : > { %v3220_v62 = vsel %vm286_vm5, %v3214_v13, 0  ;;  %v3218_v46 = vsel %vm286_vm5, %v3213_v53, 0 }
 0x2a6   : > { %v3383_v61 = vand.u32 4294901760, %v3220_v62  ;;  %v3237_v4 = vand.u32 4294901760, %v3218_v46 }
 0x2a8   : > { %v3410_v7 = vsub.f32 %v3220_v62, %v3383_v61  ;;  %v3264_v34 = vsub.f32 %v3218_v46, %v3237_v4  ;;  %3238 = vmatpush.msrb.mxu0 %v3237_v4  ;;  %3314 = vmatpush.msrb.mxu3 %v3237_v4 }
 0x2a9   : > { %3244 = vmatmul.f32.vlgmr.msrb.gmra.mxu0 %v3243_v8  ;;  %3318 = vmatmul.f32.vlgmr.msrb.gmra.mxu3 %v7067_v29 }
 0x2aa   : > { %3291 = vmatpush.msrb.mxu2 %v3264_v34  ;;  %v3265_v39 = vand.u32 4294901760, %v3264_v34  ;;  %v3411_v35 = vand.u32 4294901760, %v3410_v7 }
 0x2ab   : > { %v3185_v45 = vpop.permute.xlu1 %3184  ;;  %3294 = vmatmul.f32.vlgmr.msrb.gmra.mxu2 %v7064_v63  ;;  %v3183_v18 = vpop.permute.xlu0 %3182 }
 0x2ac   : > { %v3189_v11 = vsel %vm253_vm2, %v3185_v45, %v3187_v22  ;;  %3384 = vmatpush.msra.mxu2 %v3383_v61  ;;  %v3188_v14 = vsel %vm253_vm2, %v3183_v18, %v3185_v45  ;;  %3340 = vmatpush.msra.mxu0 %v3265_v39  ;;  %v3266_v60 = vsub.f32 %v3264_v34, %v3265_v39  ;;  %v4157_v34 = vpop.permute.xlu2 %4156 }
 0x2ad   : > { %v3193_v26 = vsel %vm6450_vm3, %v3189_v11, 0.0  ;;  %v3192_v36 = vsel %vm6462_vm6, %v3188_v14, 0.0  ;;  %v3412_v25 = vsub.f32 %v3410_v7, %v3411_v35 }
 0x2ae   : > { %3486 = vmatpush.msrb.mxu2 %v3411_v35  ;;  %3437 = vmatpush.msrb.mxu0 %v3410_v7  ;;  %v3521_v42 = vsel %vm286_vm5, %v3193_v26, 0  ;;  %v3518_v24 = vsel %vm286_vm5, %v3192_v36, 0  ;;  %v3267_v27 = vand.u32 4294901760, %v3266_v60  ;;  %v6187_v26 = vld [vmem:[%s7437_s2 + $0xc] sm:$0xf] }
 0x2af   : > { %v3684_v43 = vand.u32 4294901760, %v3521_v42  ;;  %v3538_v15 = vand.u32 4294901760, %v3518_v24  ;;  %v3413_v19 = vand.u32 4294901760, %v3412_v25  ;;  %v4167_v25 = vsel %vm282_vm1, %v6187_v26, 0 }
 0x2b0   : > { %3268 = vmatpush.msrb.mxu1 %v3267_v27  ;;  %v7153_v27 = vand.u32 4294901760, %v4167_v25 }
 0x2b1   : > { %v3711_v48 = vsub.f32 %v3521_v42, %v3684_v43  ;;  %v3565_v1 = vsub.f32 %v3518_v24, %v3538_v15  ;;  %3414 = vmatpush.msra.mxu3 %v3413_v19  ;;  %3270 = vmatmul.f32.vlgmr.msrb.gmra.mxu1 %v7061_v17 }
 0x2b2   : > { %3342 = vmatmul.f32.vlgmr.msra.gmra.mxu0 %v7061_v17  ;;  %3362 = vmatpush.msra.mxu1 %v3237_v4 }
 0x2b3   : > { %v3712_v16 = vand.u32 4294901760, %v3711_v48  ;;  %v3566_v21 = vand.u32 4294901760, %v3565_v1  ;;  %3416 = vmatmul.f32.vlgmr.msra.gmra.mxu3 %v7061_v17  ;;  %3539 = vmatpush.msra.mxu0 %v3538_v15  ;;  %v3828_v57 = vpop.permute.xlu1 %3827  ;;  %v3826_v28 = vpop.permute.xlu0 %3825 }
 0x2b4   : > { %3508 = vmatpush.msrb.mxu3 %v3383_v61  ;;  %3460 = vmatpush.msrb.mxu1 %v3383_v61  ;;  %v3831_v54 = vsel %vm904_vm7, %v3826_v28, %v3828_v57  ;;  %v3832_v41 = vsel %vm904_vm7, %v3828_v57, %v3830_v51  ;;  %v4479_v57 = vsel %vm286_vm5, %v7033_v49, 0 }
 0x2b5   : > { %3390 = vmatmul.f32.vlgmr.msra.gmra.mxu2 %v3243_v8  ;;  %v3567_v37 = vsub.f32 %v3565_v1, %v3566_v21  ;;  %v3713_v40 = vsub.f32 %v3711_v48, %v3712_v16  ;;  %v3835_v31 = vsel %vm6509_vm8, %v3831_v54, 0.0  ;;  %v3836_v2 = vsel %vm6516_vm9, %v3832_v41, 0.0 }
 0x2b6   : > { %3615 = vmatpush.msra.mxu3 %v3538_v15  ;;  %3592 = vmatpush.msra.mxu2 %v3565_v1  ;;  %v3843_v0 = vsel %vm286_vm5, %v3835_v31, 0  ;;  %v3846_v5 = vsel %vm286_vm5, %v3836_v2, 0 }
 0x2b7   : > { %v3568_v33 = vand.u32 4294901760, %v3567_v37  ;;  %v3714_v52 = vand.u32 4294901760, %v3713_v40  ;;  %v3863_v10 = vand.u32 4294901760, %v3843_v0  ;;  %v7118_v9 = vand.u32 4294901760, %v3846_v5 }
 0x2b8   : > { %v4481_v37 = vsel %vm286_vm5, %v7035_v20, 0  ;;  %v4498_v40 = vand.u32 4294901760, %v4479_v57 }
 0x2b9   : > { %3364 = vmatmul.f32.vlgmr.msra.gmra.mxu1 %v7061_v17  ;;  %v3890_v55 = vsub.f32 %v3843_v0, %v3863_v10  ;;  %v4036_v56 = vsub.f32 %v3846_v5, %v7118_v9  ;;  %v7174_v54 = vand.u32 4294901760, %v4481_v37 }
 0x2ba   : > { %3440 = vmatmul.f32.vlgmr.msrb.gmra.mxu0 %v7064_v63  ;;  %3569 = vmatpush.msra.mxu1 %v3568_v33  ;;  %v6186_v63 = vld [vmem:[%s7437_s2 + $0x8] sm:$0xf]  ;;  %v4525_v33 = vsub.f32 %v4479_v57, %v4498_v40 }
 0x2bb   : > { %3510 = vmatmul.f32.vlgmr.msrb.gmra.mxu3 %v7061_v17  ;;  %3641 = vmatpush.msrb.mxu0 %v3566_v21  ;;  %v3891_v13 = vand.u32 4294901760, %v3890_v55  ;;  %v4155_v62 = vpop.permute.xlu1 %4154  ;;  %v4153_v46 = vpop.permute.xlu0 %4152  ;;  %v4671_v20 = vsub.f32 %v4481_v37, %v7174_v54 }
 0x2bc   : > { %3715 = vmatpush.msrb.mxu3 %v3714_v52  ;;  %v4158_v7 = vsel %vm1232_vm10, %v4153_v46, %v4155_v62  ;;  %v4159_v22 = vsel %vm1232_vm10, %v4155_v62, %v4157_v34  ;;  %v4526_v52 = vand.u32 4294901760, %v4525_v33 }
 0x2bd   : > { %3488 = vmatmul.f32.vlgmr.msrb.gmra.mxu2 %v7061_v17  ;;  %v3840_v17 = vsel %vm282_vm1, %v6186_v63, 0  ;;  %v3892_v8 = vsub.f32 %v3890_v55, %v3891_v13  ;;  %v4162_v39 = vsel %vm6462_vm6, %v4158_v7, 0.0  ;;  %v4163_v18 = vsel %vm6450_vm3, %v4159_v22, 0.0 }
 0x2be   : > { %3685 = vmatpush.msrb.mxu2 %v3684_v43  ;;  %v7124_v30 = vand.u32 4294901760, %v3840_v17  ;;  %v4170_v6 = vsel %vm286_vm5, %v4162_v39, 0  ;;  %v4173_v14 = vsel %vm286_vm5, %v4163_v18, 0  ;;  %v4672_v41 = vand.u32 4294901760, %v4671_v20 }
 0x2bf   : > { %v3893_v59 = vand.u32 4294901760, %v3892_v8  ;;  %v4190_v60 = vand.u32 4294901760, %v4170_v6  ;;  %v4336_v36 = vand.u32 4294901760, %v4173_v14  ;;  %v4527_v0 = vsub.f32 %v4525_v33, %v4526_v52  ;;  %v6189_v8 = vld [vmem:[%s7437_s2 + $0x14] sm:$0xf] }
 0x2c0   : > { %v3866_v53 = vsub.f32 %v3840_v17, %v7124_v30  ;;  %v4673_v5 = vsub.f32 %v4671_v20, %v4672_v41 }
 0x2c1   : > { %3464 = vmatmul.f32.vlgmr.msrb.gmra.mxu1 %v7067_v29  ;;  %v4037_v29 = vand.u32 4294901760, %v4036_v56  ;;  %v4217_v42 = vsub.f32 %v4170_v6, %v4190_v60  ;;  %v4363_v24 = vsub.f32 %v4173_v14, %v4336_v36 }
 0x2c2   : > { %3545 = vmatmul.f32.vlgmr.msra.gmra.mxu0 %v3544_v3  ;;  %3663 = vmatpush.msrb.mxu1 %v3538_v15  ;;  %v7130_v4 = vand.u32 4294901760, %v3866_v53  ;;  %v4193_v15 = vsub.f32 %v4167_v25, %v7153_v27 }
 0x2c3   : > { %3619 = vmatmul.f32.vlgmr.msra.gmra.mxu3 %v7098_v50  ;;  %3738 = vmatpush.msra.mxu0 %v3711_v48  ;;  %v4038_v61 = vsub.f32 %v4036_v56, %v4037_v29  ;;  %v4790_v38 = vpop.permute.xlu1 %4789  ;;  %v4788_v2 = vpop.permute.xlu0 %4787 }
 0x2c4   : > { %3809 = vmatpush.msra.mxu3 %v3684_v43  ;;  %v3868_v45 = vsub.f32 %v3866_v53, %v7130_v4  ;;  %v7160_v1 = vand.u32 4294901760, %v4193_v15  ;;  %v4793_v63 = vsel %vm1868_vm11, %v4788_v2, %v4790_v38 }
 0x2c5   : > { %3595 = vmatmul.f32.vlgmr.msra.gmra.mxu2 %v7094_v47  ;;  %v4039_v35 = vand.u32 4294901760, %v4038_v61 }
 0x2c6   : > { %3787 = vmatpush.msra.mxu2 %v3712_v16  ;;  %v3869_v11 = vand.u32 4294901760, %v3868_v45  ;;  %v4195_v21 = vsub.f32 %v4193_v15, %v7160_v1 }
 0x2c8   : > { %v4196_v28 = vand.u32 4294901760, %v4195_v21 }
 0x2c9   : > { %3571 = vmatmul.f32.vlgmr.msra.gmra.mxu1 %v7089_v32 }
 0x2ca   : > { %3643 = vmatmul.f32.vlgmr.msrb.gmra.mxu0 %v7089_v32  ;;  %3761 = vmatpush.msra.mxu1 %v3684_v43  ;;  %v4364_v43 = vand.u32 4294901760, %v4363_v24 }
 0x2cb   : > { %3717 = vmatmul.f32.vlgmr.msrb.gmra.mxu3 %v7089_v32  ;;  %3864 = vmatpush.msrb.mxu0 %v3863_v10  ;;  %v5117_v45 = vpop.permute.xlu1 %5116  ;;  %v5115_v18 = vpop.permute.xlu0 %5114 }
 0x2cc   : > { %3940 = vmatpush.msrb.mxu3 %v3863_v10  ;;  %v4365_v48 = vsub.f32 %v4363_v24, %v4364_v43  ;;  %v5120_v26 = vsel %vm2196_vm12, %v5115_v18, %v5117_v45 }
 0x2cd   : > { %3691 = vmatmul.f32.vlgmr.msrb.gmra.mxu2 %v3544_v3  ;;  %v4792_v3 = vpop.permute.xlu2 %4791 }
 0x2ce   : > { %3917 = vmatpush.msrb.mxu2 %v3890_v55  ;;  %v4366_v16 = vand.u32 4294901760, %v4365_v48  ;;  %v4794_v17 = vsel %vm1868_vm11, %v4790_v38, %v4792_v3  ;;  %v4797_v55 = vsel %vm6509_vm8, %v4793_v63, 0.0  ;;  %v6190_v48 = vld [vmem:[%s7437_s2 + $0x18] sm:$0xf] }
 0x2d1   : > { %3665 = vmatmul.f32.vlgmr.msrb.gmra.mxu1 %v7089_v32 }
 0x2d2   : > { %3741 = vmatmul.f32.vlgmr.msra.gmra.mxu0 %v7094_v47  ;;  %3894 = vmatpush.msrb.mxu1 %v3893_v59 }
 0x2d3   : > { %3811 = vmatmul.f32.vlgmr.msra.gmra.mxu3 %v7089_v32  ;;  %3966 = vmatpush.msra.mxu0 %v3891_v13  ;;  %v4798_v13 = vsel %vm6516_vm9, %v4794_v17, 0.0 }
 0x2d4   : > { %4040 = vmatpush.msra.mxu3 %v4039_v35  ;;  %v4808_v62 = vsel %vm286_vm5, %v4798_v13, 0 }
 0x2d5   : > { %3789 = vmatmul.f32.vlgmr.msra.gmra.mxu2 %v7089_v32  ;;  %v4218_v32 = vand.u32 4294901760, %v4217_v42  ;;  %v7208_v61 = vand.u32 4294901760, %v4808_v62 }
 0x2d6   : > { %4010 = vmatpush.msra.mxu2 %v7118_v9 }
 0x2d7   : > { %v4219_v19 = vsub.f32 %v4217_v42, %v4218_v32  ;;  %v4998_v34 = vsub.f32 %v4808_v62, %v7208_v61 }
 0x2d9   : > { %3765 = vmatmul.f32.vlgmr.msra.gmra.mxu1 %v7098_v50  ;;  %v4220_v47 = vand.u32 4294901760, %v4219_v19  ;;  %v6188_v50 = vld [vmem:[%s7437_s2 + $0x10] sm:$0xf]  ;;  %v4999_v39 = vand.u32 4294901760, %v4998_v34 }
 0x2da   : > { %3870 = vmatmul.f32.vlgmr.msrb.gmra.mxu0 %v3869_v11  ;;  %3988 = vmatpush.msra.mxu1 %v3863_v10  ;;  %v4477_v49 = vsel %vm282_vm1, %v6188_v50, 0 }
 0x2db   : > { %3944 = vmatmul.f32.vlgmr.msrb.gmra.mxu3 %v7130_v4  ;;  %4063 = vmatpush.msrb.mxu0 %v4036_v56  ;;  %v7179_v51 = vand.u32 4294901760, %v4477_v49  ;;  %v4674_v56 = vand.u32 4294901760, %v4673_v5  ;;  %v5000_v14 = vsub.f32 %v4998_v34, %v4999_v39 }
 0x2dc   : > { %4134 = vmatpush.msrb.mxu3 %v7118_v9 }
 0x2dd   : > { %3920 = vmatmul.f32.vlgmr.msrb.gmra.mxu2 %v3866_v53  ;;  %v7184_v31 = vsub.f32 %v4477_v49, %v7179_v51  ;;  %v5446_v49 = vpop.permute.xlu1 %5445 }
 0x2de   : > { %4112 = vmatpush.msrb.mxu2 %v4037_v29  ;;  %v4805_v29 = vsel %vm286_vm5, %v4797_v55, 0 }
 0x2df   : > { %v7188_v10 = vand.u32 4294901760, %v7184_v31  ;;  %v4825_v46 = vand.u32 4294901760, %v4805_v29 }
 0x2e1   : > { %3896 = vmatmul.f32.vlgmr.msrb.gmra.mxu1 %v7124_v30  ;;  %v4852_v7 = vsub.f32 %v4805_v29, %v4825_v46 }
 0x2e2   : > { %3968 = vmatmul.f32.vlgmr.msra.gmra.mxu0 %v7124_v30  ;;  %4086 = vmatpush.msrb.mxu1 %v7118_v9  ;;  %v4528_v9 = vand.u32 4294901760, %v4527_v0 }
 0x2e3   : > { %4042 = vmatmul.f32.vlgmr.msra.gmra.mxu3 %v7124_v30  ;;  %4191 = vmatpush.msra.mxu0 %v4190_v60  ;;  %v4853_v22 = vand.u32 4294901760, %v4852_v7 }
 0x2e4   : > { %4267 = vmatpush.msra.mxu3 %v4190_v60 }
 0x2e5   : > { %4016 = vmatmul.f32.vlgmr.msra.gmra.mxu2 %v3869_v11  ;;  %v4854_v6 = vsub.f32 %v4852_v7, %v4853_v22  ;;  %v5119_v11 = vpop.permute.xlu2 %5118 }
 0x2e6   : > { %4244 = vmatpush.msra.mxu2 %v4217_v42  ;;  %v5121_v25 = vsel %vm2196_vm12, %v5117_v45, %v5119_v11  ;;  %v5124_v42 = vsel %vm6462_vm6, %v5120_v26, 0.0 }
 0x2e9   : > { %3990 = vmatmul.f32.vlgmr.msra.gmra.mxu1 %v7124_v30 }
 0x2ea   : > { %4066 = vmatmul.f32.vlgmr.msrb.gmra.mxu0 %v3866_v53  ;;  %4221 = vmatpush.msra.mxu1 %v4220_v47 }
 0x2eb   : > { %4136 = vmatmul.f32.vlgmr.msrb.gmra.mxu3 %v7124_v30  ;;  %4293 = vmatpush.msrb.mxu0 %v4218_v32  ;;  %v5125_v32 = vsel %vm6450_vm3, %v5121_v25, 0.0 }
 0x2ec   : > { %4367 = vmatpush.msrb.mxu3 %v4366_v16 }
 0x2ed   : > { %4114 = vmatmul.f32.vlgmr.msrb.gmra.mxu2 %v7124_v30  ;;  %v4503_v30 = vsub.f32 %v7184_v31, %v7188_v10  ;;  %v5448_v0 = vpop.permute.xlu2 %5447 }
 0x2ee   : > { %4337 = vmatpush.msrb.mxu2 %v4336_v36  ;;  %v5450_v17 = vsel %vm2526_vm13, %v5446_v49, %v5448_v0 }
 0x2ef   : > { %v4504_v53 = vand.u32 4294901760, %v4503_v30 }
 0x2f1   : > { %4090 = vmatmul.f32.vlgmr.msrb.gmra.mxu1 %v7130_v4  ;;  %v4802_v4 = vsel %vm282_vm1, %v6189_v8, 0 }
 0x2f2   : > { %4197 = vmatmul.f32.vlgmr.msra.gmra.mxu0 %v4196_v28  ;;  %4315 = vmatpush.msrb.mxu1 %v4190_v60  ;;  %v7215_v59 = vand.u32 4294901760, %v4802_v4 }
 0x2f3   : > { %4271 = vmatmul.f32.vlgmr.msra.gmra.mxu3 %v7160_v1  ;;  %4390 = vmatpush.msra.mxu0 %v4363_v24  ;;  %v5001_v24 = vand.u32 4294901760, %v5000_v14 }
 0x2f4   : > { %4461 = vmatpush.msra.mxu3 %v4336_v36  ;;  %v7221_v35 = vsub.f32 %v4802_v4, %v7215_v59 }
 0x2f5   : > { %4247 = vmatmul.f32.vlgmr.msra.gmra.mxu2 %v4193_v15 }
 0x2f6   : > { %4439 = vmatpush.msra.mxu2 %v4364_v43  ;;  %v7225_v60 = vand.u32 4294901760, %v7221_v35  ;;  %v5132_v43 = vsel %vm286_vm5, %v5124_v42, 0 }
 0x2f7   : > { %v7242_v19 = vand.u32 4294901760, %v5132_v43 }
 0x2f9   : > { %4223 = vmatmul.f32.vlgmr.msra.gmra.mxu1 %v7153_v27  ;;  %v5179_v47 = vsub.f32 %v5132_v43, %v7242_v19 }
 0x2fa   : > { %4295 = vmatmul.f32.vlgmr.msrb.gmra.mxu0 %v7153_v27  ;;  %4413 = vmatpush.msra.mxu1 %v4336_v36  ;;  %v4855_v36 = vand.u32 4294901760, %v4854_v6 }
 0x2fb   : > { %4369 = vmatmul.f32.vlgmr.msrb.gmra.mxu3 %v7153_v27  ;;  %4499 = vmatpush.msrb.mxu0 %v4498_v40 }
 0x2fc   : > { %4575 = vmatpush.msrb.mxu3 %v4498_v40 }
 0x2fd   : > { %4343 = vmatmul.f32.vlgmr.msrb.gmra.mxu2 %v4196_v28  ;;  %v5180_v28 = vand.u32 4294901760, %v5179_v47 }
 0x2fe   : > { %4552 = vmatpush.msrb.mxu2 %v4525_v33 }
 0x301   : > { %4317 = vmatmul.f32.vlgmr.msrb.gmra.mxu1 %v7153_v27 }
 0x302   : > { %4393 = vmatmul.f32.vlgmr.msra.gmra.mxu0 %v4193_v15  ;;  %4529 = vmatpush.msrb.mxu1 %v4528_v9  ;;  %v5135_v15 = vsel %vm286_vm5, %v5125_v32, 0  ;;  %v5765_v32 = vpop.permute.xlu1 %5764 }
 0x303   : > { %4463 = vmatmul.f32.vlgmr.msra.gmra.mxu3 %v7153_v27  ;;  %4601 = vmatpush.msra.mxu0 %v4526_v52  ;;  %v7248_v23 = vand.u32 4294901760, %v5135_v15 }
 0x304   : > { %4675 = vmatpush.msra.mxu3 %v4674_v56 }
 0x305   : > { %4441 = vmatmul.f32.vlgmr.msra.gmra.mxu2 %v7153_v27  ;;  %v4830_v27 = vsub.f32 %v7221_v35, %v7225_v60  ;;  %v7256_v16 = vsub.f32 %v5135_v15, %v7248_v23  ;;  %v5767_v15 = vpop.permute.xlu2 %5766 }
 0x306   : > { %4645 = vmatpush.msra.mxu2 %v7174_v54 }
 0x307   : > { %v4831_v44 = vand.u32 4294901760, %v4830_v27  ;;  %v5326_v37 = vand.u32 4294901760, %v7256_v16 }
 0x309   : > { %4417 = vmatmul.f32.vlgmr.msra.gmra.mxu1 %v7160_v1  ;;  %v5129_v1 = vsel %vm282_vm1, %v6190_v48, 0 }
 0x30a   : > { %4505 = vmatmul.f32.vlgmr.msrb.gmra.mxu0 %v4504_v53  ;;  %4623 = vmatpush.msra.mxu1 %v4498_v40  ;;  %v7258_v57 = vand.u32 4294901760, %v5129_v1 }
 0x30b   : > { %4579 = vmatmul.f32.vlgmr.msrb.gmra.mxu3 %v7188_v10  ;;  %4698 = vmatpush.msrb.mxu0 %v4671_v20 }
 0x30c   : > { %4769 = vmatpush.msrb.mxu3 %v7174_v54  ;;  %v7265_v40 = vsub.f32 %v5129_v1, %v7258_v57 }
 0x30d   : > { %4555 = vmatmul.f32.vlgmr.msrb.gmra.mxu2 %v7184_v31 }
 0x30e   : > { %4747 = vmatpush.msrb.mxu2 %v4672_v41  ;;  %v7272_v52 = vand.u32 4294901760, %v7265_v40  ;;  %v5444_v41 = vpop.permute.xlu0 %5443 }
 0x30f   : > { %v5449_v5 = vsel %vm2526_vm13, %v5444_v41, %v5446_v49 }
 0x310   : > { %v5157_v63 = vsub.f32 %v7265_v40, %v7272_v52  ;;  %v5454_v55 = vsel %vm286_vm5, %v5449_v5, 0 }
 0x311   : > { %4531 = vmatmul.f32.vlgmr.msrb.gmra.mxu1 %v7179_v51 }
 0x312   : > { %4603 = vmatmul.f32.vlgmr.msra.gmra.mxu0 %v7179_v51  ;;  %4721 = vmatpush.msrb.mxu1 %v7174_v54  ;;  %v5181_v54 = vsub.f32 %v5179_v47, %v5180_v28  ;;  %v5158_v29 = vand.u32 4294901760, %v5157_v63  ;;  %v6192_v63 = vld [vmem:[%s7437_s2 + $0x20] sm:$0xf] }
 0x313   : > { %4677 = vmatmul.f32.vlgmr.msra.gmra.mxu3 %v7179_v51  ;;  %4826 = vmatpush.msra.mxu0 %v4825_v46 }
 0x314   : > { %4902 = vmatpush.msra.mxu3 %v4825_v46  ;;  %v5182_v2 = vand.u32 4294901760, %v5181_v54 }
 0x315   : > { %4651 = vmatmul.f32.vlgmr.msra.gmra.mxu2 %v4504_v53  ;;  %v5456_v53 = vsel %vm286_vm5, %v5450_v17, 0 }
 0x316   : > { %4879 = vmatpush.msra.mxu2 %v4852_v7  ;;  %v7291_v7 = vand.u32 4294901760, %v5456_v53  ;;  %v5763_v43 = vpop.permute.xlu0 %5762 }
 0x319   : > { %4625 = vmatmul.f32.vlgmr.msra.gmra.mxu1 %v7179_v51 }
 0x31a   : > { %4701 = vmatmul.f32.vlgmr.msrb.gmra.mxu0 %v7184_v31  ;;  %4856 = vmatpush.msra.mxu1 %v4855_v36 }
 0x31b   : > { %4771 = vmatmul.f32.vlgmr.msrb.gmra.mxu3 %v7179_v51  ;;  %4928 = vmatpush.msrb.mxu0 %v4853_v22 }
 0x31c   : > { %5002 = vmatpush.msrb.mxu3 %v5001_v24 }
 0x31d   : > { %4749 = vmatmul.f32.vlgmr.msrb.gmra.mxu2 %v7179_v51  ;;  %v5327_v51 = vsub.f32 %v7256_v16, %v5326_v37 }
 0x31e   : > { %4972 = vmatpush.msrb.mxu2 %v7208_v61 }
 0x321   : > { %4725 = vmatmul.f32.vlgmr.msrb.gmra.mxu1 %v7188_v10  ;;  %v5328_v10 = vand.u32 4294901760, %v5327_v51 }
 0x322   : > { %4832 = vmatmul.f32.vlgmr.msra.gmra.mxu0 %v4831_v44  ;;  %4950 = vmatpush.msrb.mxu1 %v4825_v46  ;;  %v7285_v46 = vand.u32 4294901760, %v5454_v55 }
 0x323   : > { %4906 = vmatmul.f32.vlgmr.msra.gmra.mxu3 %v7225_v60  ;;  %5025 = vmatpush.msra.mxu0 %v4998_v34 }
 0x324   : > { %5096 = vmatpush.msra.mxu3 %v7208_v61  ;;  %v5500_v22 = vsub.f32 %v5454_v55, %v7285_v46  ;;  %v5777_v55 = vsel %vm282_vm1, %v6192_v63, 0 }
 0x325   : > { %4882 = vmatmul.f32.vlgmr.msra.gmra.mxu2 %v7221_v35 }
 0x326   : > { %5074 = vmatpush.msra.mxu2 %v4999_v39  ;;  %v3245_v21 = vpop.f32.mrf.mxu0  ;;  %v7301_v39 = vsub.f32 %v5456_v53, %v7291_v7  ;;  %v7356_v53 = vand.u32 4294901760, %v5777_v55 }
 0x328   : > { %v5647_v42 = vand.u32 4294901760, %v7301_v39 }
 0x329   : > { %4858 = vmatmul.f32.vlgmr.msra.gmra.mxu1 %v7215_v59 }
 0x32a   : > { %4930 = vmatmul.f32.vlgmr.msrb.gmra.mxu0 %v7215_v59  ;;  %5048 = vmatpush.msra.mxu1 %v7208_v61  ;;  %v6191_v61 = vld [vmem:[%s7437_s2 + $0x1c] sm:$0xf] }
 0x32b   : > { %5004 = vmatmul.f32.vlgmr.msrb.gmra.mxu3 %v7215_v59  ;;  %5153 = vmatpush.msrb.mxu0 %v7242_v19 }
 0x32c   : > { %5229 = vmatpush.msrb.mxu3 %v7242_v19  ;;  %v3319_v50 = vpop.f32.mrf.mxu3 }
 0x32d   : > { %4978 = vmatmul.f32.vlgmr.msrb.gmra.mxu2 %v4831_v44 }
 0x32e   : > { %5206 = vmatpush.msrb.mxu2 %v5179_v47  ;;  %v3271_v33 = vpop.f32.mrf.mxu1  ;;  %v3295_v20 = vpop.f32.mrf.mxu2  ;;  %v5768_v47 = vsel %vm2846_vm14, %v5763_v43, %v5765_v32 }
 0x32f   : > { %v3272_v31 = vadd.f32 %v3271_v33, %v3245_v21  ;;  %v3343_v38 = vpop.f32.mrf.mxu0  ;;  %v5772_v49 = vsel %vm6509_vm8, %v5768_v47, 0.0 }
 0x331   : > { %v3296_v3 = vadd.f32 %v3295_v20, %v3272_v31  ;;  %4952 = vmatmul.f32.vlgmr.msrb.gmra.mxu1 %v7215_v59  ;;  %v5780_v31 = vsel %vm286_vm5, %v5772_v49, 0 }
 0x332   : > { %5028 = vmatmul.f32.vlgmr.msra.gmra.mxu0 %v7221_v35  ;;  %5183 = vmatpush.msrb.mxu1 %v5182_v2 }
 0x333   : > { %v3320_v9 = vadd.f32 %v3319_v50, %v3296_v3  ;;  %5098 = vmatmul.f32.vlgmr.msra.gmra.mxu3 %v7215_v59  ;;  %5255 = vmatpush.msra.mxu0 %v5180_v28  ;;  %v5769_v50 = vsel %vm2846_vm14, %v5765_v32, %v5767_v15 }
 0x334   : > { %5329 = vmatpush.msra.mxu3 %v5328_v10  ;;  %v5773_v41 = vsel %vm6516_vm9, %v5769_v50, 0.0  ;;  %v7338_v10 = vand.u32 4294901760, %v5780_v31 }
 0x335   : > { %5076 = vmatmul.f32.vlgmr.msra.gmra.mxu2 %v7215_v59  ;;  %v3344_v56 = vadd.f32 %v3343_v38, %v3320_v9  ;;  %v5452_v59 = vsel %vm282_vm1, %v6191_v61, 0  ;;  %v5783_v0 = vsel %vm286_vm5, %v5773_v41, 0 }
 0x336   : > { %5299 = vmatpush.msra.mxu2 %v7248_v23  ;;  %v3365_v30 = vpop.f32.mrf.mxu1  ;;  %v3417_v13 = vpop.f32.mrf.mxu3  ;;  %v7303_v6 = vand.u32 4294901760, %v5452_v59 }
 0x337   : > { %v3441_v62 = vpop.f32.mrf.mxu0  ;;  %v3366_v35 = vadd.f32 %v3365_v30, %v3344_v56  ;;  %v5827_v56 = vsub.f32 %v5780_v31, %v7338_v10 }
 0x338   : > { %v3391_v8 = vpop.f32.mrf.mxu2  ;;  %v7310_v24 = vsub.f32 %v5452_v59, %v7303_v6  ;;  %v7362_v59 = vsub.f32 %v5777_v55, %v7356_v53 }
 0x339   : > { %v3418_v4 = vadd.f32 %v3417_v13, %v3391_v8  ;;  %5052 = vmatmul.f32.vlgmr.msra.gmra.mxu1 %v7225_v60  ;;  %v5501_v60 = vand.u32 4294901760, %v5500_v22  ;;  %v5828_v8 = vand.u32 4294901760, %v5827_v56 }
 0x33a   : > { %5159 = vmatmul.f32.vlgmr.msrb.gmra.mxu0 %v5158_v29  ;;  %5277 = vmatpush.msra.mxu1 %v7242_v19  ;;  %v7319_v1 = vand.u32 4294901760, %v7310_v24 }
 0x33b   : > { %5233 = vmatmul.f32.vlgmr.msrb.gmra.mxu3 %v7272_v52  ;;  %5352 = vmatpush.msrb.mxu0 %v7256_v16  ;;  %v3442_v34 = vadd.f32 %v3441_v62, %v3418_v4  ;;  %v5502_v44 = vsub.f32 %v5500_v22, %v5501_v60 }
 0x33c   : > { %5423 = vmatpush.msrb.mxu3 %v7248_v23  ;;  %v5478_v20 = vsub.f32 %v7310_v24, %v7319_v1 }
 0x33d   : > { %5209 = vmatmul.f32.vlgmr.msrb.gmra.mxu2 %v7265_v40 }
 0x33e   : > { %5401 = vmatpush.msrb.mxu2 %v5326_v37  ;;  %v3465_v45 = vpop.f32.mrf.mxu1  ;;  %v3511_v18 = vpop.f32.mrf.mxu3  ;;  %v5503_v37 = vand.u32 4294901760, %v5502_v44  ;;  %v5479_v2 = vand.u32 4294901760, %v5478_v20 }
 0x33f   : > { %v3466_v11 = vadd.f32 %v3465_v45, %v3442_v34  ;;  %v3546_v14 = vpop.f32.mrf.mxu0 }
 0x340   : > { %v3489_v26 = vpop.f32.mrf.mxu2  ;;  %v3547_v36 = vadd.f32 %v3546_v14, %v3366_v35 }
 0x341   : > { %v3490_v25 = vadd.f32 %v3489_v26, %v3466_v11  ;;  %5185 = vmatmul.f32.vlgmr.msrb.gmra.mxu1 %v7258_v57  ;;  %v7368_v11 = vand.u32 4294901760, %v7362_v59 }
 0x342   : > { %5257 = vmatmul.f32.vlgmr.msra.gmra.mxu0 %v7258_v57  ;;  %5375 = vmatpush.msrb.mxu1 %v7248_v23  ;;  %v5648_v23 = vsub.f32 %v7301_v39, %v5647_v42 }
 0x343   : > { %v3512_v27 = vadd.f32 %v3511_v18, %v3490_v25  ;;  %5331 = vmatmul.f32.vlgmr.msra.gmra.mxu3 %v7258_v57  ;;  %5474 = vmatpush.msra.mxu0 %v7285_v46 }
 0x344   : > { %5550 = vmatpush.msra.mxu3 %v7285_v46  ;;  %v5649_v33 = vand.u32 4294901760, %v5648_v23 }
 0x345   : > { %5305 = vmatmul.f32.vlgmr.msra.gmra.mxu2 %v5158_v29 }
 0x346   : > { %5527 = vmatpush.msra.mxu2 %v5500_v22  ;;  %v3572_v19 = vpop.f32.mrf.mxu1  ;;  %v3620_v48 = vpop.f32.mrf.mxu3 }
 0x347   : > { %v3573_v16 = vadd.f32 %v3572_v19, %v3547_v36  ;;  %v3644_v21 = vpop.f32.mrf.mxu0 }
 0x348   : > { %v3596_v28 = vpop.f32.mrf.mxu2 }
 0x349   : > { %v3597_v54 = vadd.f32 %v3596_v28, %v3573_v16  ;;  %5279 = vmatmul.f32.vlgmr.msra.gmra.mxu1 %v7258_v57 }
 0x34a   : > { %5355 = vmatmul.f32.vlgmr.msrb.gmra.mxu0 %v7265_v40  ;;  %5504 = vmatpush.msra.mxu1 %v5503_v37 }
 0x34b   : > { %v3621_v51 = vadd.f32 %v3620_v48, %v3597_v54  ;;  %5425 = vmatmul.f32.vlgmr.msrb.gmra.mxu3 %v7258_v57  ;;  %5576 = vmatpush.msrb.mxu0 %v5501_v60 }
 0x34c   : > { %5650 = vmatpush.msrb.mxu3 %v5649_v33 }
 0x34d   : > { %v3645_v38 = vadd.f32 %v3644_v21, %v3621_v51  ;;  %5403 = vmatmul.f32.vlgmr.msrb.gmra.mxu2 %v7258_v57  ;;  %v7344_v57 = vand.u32 4294901760, %v5783_v0 }
 0x34e   : > { %5620 = vmatpush.msrb.mxu2 %v7291_v7  ;;  %v3666_v58 = vpop.f32.mrf.mxu1  ;;  %v3718_v40 = vpop.f32.mrf.mxu3 }
 0x34f   : > { %v7336_v3 = vadd.f32 %v3666_v58, %v3645_v38  ;;  %v3742_v5 = vpop.f32.mrf.mxu0 }
 0x350   : > { %v3692_v12 = vpop.f32.mrf.mxu2 }
 0x351   : > { %v3693_v9 = vadd.f32 %v3692_v12, %v3512_v27  ;;  %5379 = vmatmul.f32.vlgmr.msrb.gmra.mxu1 %v7272_v52  ;;  %v5973_v52 = vsub.f32 %v5783_v0, %v7344_v57 }
 0x352   : > { %5480 = vmatmul.f32.vlgmr.msra.gmra.mxu0 %v5479_v2  ;;  %5598 = vmatpush.msrb.mxu1 %v7285_v46 }
 0x353   : > { %v3719_v17 = vadd.f32 %v3718_v40, %v3693_v9  ;;  %5554 = vmatmul.f32.vlgmr.msra.gmra.mxu3 %v7319_v1  ;;  %5673 = vmatpush.msra.mxu0 %v7301_v39  ;;  %v5974_v34 = vand.u32 4294901760, %v5973_v52  ;;  %v5829_v39 = vsub.f32 %v5827_v56, %v5828_v8 }
 0x354   : > { %5744 = vmatpush.msra.mxu3 %v7291_v7 }
 0x355   : > { %v3743_v30 = vadd.f32 %v3742_v5, %v3719_v17  ;;  %5530 = vmatmul.f32.vlgmr.msra.gmra.mxu2 %v7310_v24  ;;  %v5975_v45 = vsub.f32 %v5973_v52, %v5974_v34  ;;  %v5830_v26 = vand.u32 4294901760, %v5829_v39 }
 0x356   : > { %5722 = vmatpush.msra.mxu2 %v5647_v42  ;;  %v3766_v13 = vpop.f32.mrf.mxu1  ;;  %v3812_v29 = vpop.f32.mrf.mxu3  ;;  %v5805_v42 = vsub.f32 %v7362_v59, %v7368_v11 }
 0x357   : > { %v3767_v62 = vadd.f32 %v3766_v13, %v3743_v30  ;;  %v3871_v46 = vpop.f32.mrf.mxu0  ;;  %v5976_v25 = vand.u32 4294901760, %v5975_v45 }
 0x358   : > { %v3790_v61 = vpop.f32.mrf.mxu2  ;;  %v5806_v44 = vand.u32 4294901760, %v5805_v42 }
 0x359   : > { %v3791_v4 = vadd.f32 %v3790_v61, %v3767_v62  ;;  %5506 = vmatmul.f32.vlgmr.msra.gmra.mxu1 %v7303_v6 }
 0x35a   : > { %5578 = vmatmul.f32.vlgmr.msrb.gmra.mxu0 %v7303_v6  ;;  %5696 = vmatpush.msra.mxu1 %v7291_v7 }
 0x35b   : > { %5652 = vmatmul.f32.vlgmr.msrb.gmra.mxu3 %v7303_v6  ;;  %5801 = vmatpush.msrb.mxu0 %v7338_v10  ;;  %v3813_v22 = vadd.f32 %v3812_v29, %v3791_v4 }
 0x35c   : > { %5877 = vmatpush.msrb.mxu3 %v7338_v10 }
 0x35d   : > { %5626 = vmatmul.f32.vlgmr.msrb.gmra.mxu2 %v5479_v2 }
 0x35e   : > { %5854 = vmatpush.msrb.mxu2 %v5827_v56  ;;  %v3897_v35 = vpop.f32.mrf.mxu1  ;;  %v3945_v18 = vpop.f32.mrf.mxu3 }
 0x35f   : > { %v3898_v7 = vadd.f32 %v3897_v35, %v3871_v46  ;;  %v3969_v14 = vpop.f32.mrf.mxu0 }
 0x360   : > { %v3921_v60 = vpop.f32.mrf.mxu2 }
 0x361   : > { %v3922_v36 = vadd.f32 %v3921_v60, %v3898_v7  ;;  %5600 = vmatmul.f32.vlgmr.msrb.gmra.mxu1 %v7303_v6 }
 0x362   : > { %5676 = vmatmul.f32.vlgmr.msra.gmra.mxu0 %v7310_v24  ;;  %5831 = vmatpush.msrb.mxu1 %v5830_v26 }
 0x363   : > { %5746 = vmatmul.f32.vlgmr.msra.gmra.mxu3 %v7303_v6  ;;  %5903 = vmatpush.msra.mxu0 %v5828_v8  ;;  %v3946_v27 = vadd.f32 %v3945_v18, %v3922_v36 }
 0x364   : > { %5977 = vmatpush.msra.mxu3 %v5976_v25 }
 0x365   : > { %5724 = vmatmul.f32.vlgmr.msra.gmra.mxu2 %v7303_v6  ;;  %v3970_v32 = vadd.f32 %v3969_v14, %v3946_v27 }
 0x366   : > { %5947 = vmatpush.msra.mxu2 %v7344_v57  ;;  %v3991_v43 = vpop.f32.mrf.mxu1  ;;  %v4043_v15 = vpop.f32.mrf.mxu3 }
 0x367   : > { %v3992_v19 = vadd.f32 %v3991_v43, %v3970_v32  ;;  %v4067_v24 = vpop.f32.mrf.mxu0 }
 0x368   : > { %v4017_v48 = vpop.f32.mrf.mxu2 }
 0x369   : > { %v4140_v23 = vadd.f32 %v3992_v19, %v7336_v3  ;;  %5700 = vmatmul.f32.vlgmr.msra.gmra.mxu1 %v7319_v1  ;;  %v4044_v47 = vadd.f32 %v4043_v15, %v4017_v48 }
 0x36a   : > { %5807 = vmatmul.f32.vlgmr.msrb.gmra.mxu0 %v5806_v44  ;;  %5925 = vmatpush.msra.mxu1 %v7338_v10 }
 0x36b   : > { %5881 = vmatmul.f32.vlgmr.msrb.gmra.mxu3 %v7368_v11  ;;  %6000 = vmatpush.msrb.mxu0 %v5973_v52  ;;  %v4068_v6 = vadd.f32 %v4067_v24, %v4044_v47 }
 0x36c   : > { %6071 = vmatpush.msrb.mxu3 %v7344_v57 }
 0x36d   : > { %5857 = vmatmul.f32.vlgmr.msrb.gmra.mxu2 %v7362_v59 }
 0x36e   : > { %6049 = vmatpush.msrb.mxu2 %v5974_v34  ;;  %v4091_v16 = vpop.f32.mrf.mxu1  ;;  %v4137_v21 = vpop.f32.mrf.mxu3 }
 0x36f   : > { %v4092_v28 = vadd.f32 %v4091_v16, %v4068_v6  ;;  %v4198_v37 = vpop.f32.mrf.mxu0 }
 0x370   : > { %v4115_v50 = vpop.f32.mrf.mxu2 }
 0x371   : > { %v4116_v54 = vadd.f32 %v4115_v50, %v4092_v28  ;;  %5833 = vmatmul.f32.vlgmr.msrb.gmra.mxu1 %v7356_v53 }
 0x372   : > { %6023 = vmatpush.msrb.mxu1 %v7344_v57  ;;  %5905 = vmatmul.f32.vlgmr.msra.gmra.mxu0 %v7356_v53 }
 0x373   : > { %v4138_v1 = vadd.f32 %v4137_v21, %v4116_v54  ;;  %5979 = vmatmul.f32.vlgmr.msra.gmra.mxu3 %v7356_v53 }
 0x375   : > { %v4141_v49 = vadd.f32 %v4138_v1, %v3813_v22  ;;  %5953 = vmatmul.f32.vlgmr.msra.gmra.mxu2 %v5806_v44 }
 0x376   : > { %v4224_v33 = vpop.f32.mrf.mxu1  ;;  %v4272_v20 = vpop.f32.mrf.mxu3 }
 0x377   : > { %v4225_v51 = vadd.f32 %v4224_v33, %v4198_v37  ;;  %v4296_v41 = vpop.f32.mrf.mxu0 }
 0x378   : > { %v4248_v31 = vpop.f32.mrf.mxu2 }
 0x379   : > { %v4249_v38 = vadd.f32 %v4248_v31, %v4225_v51  ;;  %5927 = vmatmul.f32.vlgmr.msra.gmra.mxu1 %v7356_v53 }
 0x37a   : > { %6003 = vmatmul.f32.vlgmr.msrb.gmra.mxu0 %v7362_v59 }
 0x37b   : > { %v4273_v58 = vadd.f32 %v4272_v20, %v4249_v38  ;;  %6073 = vmatmul.f32.vlgmr.msrb.gmra.mxu3 %v7356_v53 }
 0x37d   : > { %v4297_v40 = vadd.f32 %v4296_v41, %v4273_v58  ;;  %6051 = vmatmul.f32.vlgmr.msrb.gmra.mxu2 %v7356_v53 }
 0x37e   : > { %v4318_v2 = vpop.f32.mrf.mxu1  ;;  %v4370_v0 = vpop.f32.mrf.mxu3 }
 0x37f   : > { %v4319_v3 = vadd.f32 %v4318_v2, %v4297_v40  ;;  %v4394_v5 = vpop.f32.mrf.mxu0 }
 0x380   : > { %v4344_v10 = vpop.f32.mrf.mxu2 }
 0x381   : > { %v4467_v12 = vadd.f32 %v4319_v3, %v4140_v23  ;;  %6027 = vmatmul.f32.vlgmr.msrb.gmra.mxu1 %v7368_v11  ;;  %v4371_v63 = vadd.f32 %v4370_v0, %v4344_v10 }
 0x383   : > { %v4395_v9 = vadd.f32 %v4394_v5, %v4371_v63 }
 0x386   : > { %v4418_v57 = vpop.f32.mrf.mxu1  ;;  %v4464_v17 = vpop.f32.mrf.mxu3 }
 0x387   : > { %v4419_v55 = vadd.f32 %v4418_v57, %v4395_v9  ;;  %v4506_v56 = vpop.f32.mrf.mxu0 }
 0x388   : > { %v4442_v30 = vpop.f32.mrf.mxu2 }
 0x389   : > { %v4443_v52 = vadd.f32 %v4442_v30, %v4419_v55 }
 0x38b   : > { %v4465_v13 = vadd.f32 %v4464_v17, %v4443_v52 }
 0x38d   : > { %v4468_v29 = vadd.f32 %v4465_v13, %v4141_v49 }
 0x38e   : > { %v4532_v62 = vpop.f32.mrf.mxu1  ;;  %v4580_v53 = vpop.f32.mrf.mxu3 }
 0x38f   : > { %v4533_v46 = vadd.f32 %v4532_v62, %v4506_v56  ;;  %v4604_v8 = vpop.f32.mrf.mxu0 }
 0x390   : > { %v4556_v61 = vpop.f32.mrf.mxu2 }
 0x391   : > { %v4557_v4 = vadd.f32 %v4556_v61, %v4533_v46 }
 0x393   : > { %v4581_v34 = vadd.f32 %v4580_v53, %v4557_v4 }
 0x395   : > { %v4605_v59 = vadd.f32 %v4604_v8, %v4581_v34 }
 0x396   : > { %v4626_v22 = vpop.f32.mrf.mxu1  ;;  %v4678_v39 = vpop.f32.mrf.mxu3 }
 0x397   : > { %v4627_v35 = vadd.f32 %v4626_v22, %v4605_v59  ;;  %v4702_v45 = vpop.f32.mrf.mxu0 }
 0x398   : > { %v4652_v18 = vpop.f32.mrf.mxu2 }
 0x399   : > { %v4775_v11 = vadd.f32 %v4627_v35, %v4467_v12  ;;  %v4679_v7 = vadd.f32 %v4678_v39, %v4652_v18 }
 0x39b   : > { %v4703_v14 = vadd.f32 %v4702_v45, %v4679_v7 }
 0x39e   : > { %v4726_v60 = vpop.f32.mrf.mxu1  ;;  %v4772_v26 = vpop.f32.mrf.mxu3 }
 0x39f   : > { %v4727_v36 = vadd.f32 %v4726_v60, %v4703_v14  ;;  %v4833_v25 = vpop.f32.mrf.mxu0 }
 0x3a0   : > { %v4750_v42 = vpop.f32.mrf.mxu2 }
 0x3a1   : > { %v4751_v27 = vadd.f32 %v4750_v42, %v4727_v36 }
 0x3a3   : > { %v4773_v32 = vadd.f32 %v4772_v26, %v4751_v27 }
 0x3a5   : > { %v4776_v43 = vadd.f32 %v4773_v32, %v4468_v29 }
 0x3a6   : > { %v4859_v44 = vpop.f32.mrf.mxu1  ;;  %v4907_v15 = vpop.f32.mrf.mxu3 }
 0x3a7   : > { %v4860_v19 = vadd.f32 %v4859_v44, %v4833_v25  ;;  %v4931_v24 = vpop.f32.mrf.mxu0 }
 0x3a8   : > { %v4883_v48 = vpop.f32.mrf.mxu2 }
 0x3a9   : > { %v4884_v23 = vadd.f32 %v4883_v48, %v4860_v19 }
 0x3ab   : > { %v4908_v47 = vadd.f32 %v4907_v15, %v4884_v23 }
 0x3ad   : > { %v4932_v6 = vadd.f32 %v4931_v24, %v4908_v47 }
 0x3ae   : > { %v4953_v16 = vpop.f32.mrf.mxu1  ;;  %v5005_v21 = vpop.f32.mrf.mxu3 }
 0x3af   : > { %v4954_v28 = vadd.f32 %v4953_v16, %v4932_v6  ;;  %v5029_v37 = vpop.f32.mrf.mxu0 }
 0x3b0   : > { %v4979_v50 = vpop.f32.mrf.mxu2 }
 0x3b1   : > { %v7392_v54 = vadd.f32 %v4954_v28, %v4775_v11  ;;  %v5006_v1 = vadd.f32 %v5005_v21, %v4979_v50 }
 0x3b3   : > { %v5030_v49 = vadd.f32 %v5029_v37, %v5006_v1 }
 0x3b6   : > { %v5053_v33 = vpop.f32.mrf.mxu1  ;;  %v5099_v20 = vpop.f32.mrf.mxu3 }
 0x3b7   : > { %v5054_v51 = vadd.f32 %v5053_v33, %v5030_v49  ;;  %v5160_v41 = vpop.f32.mrf.mxu0 }
 0x3b8   : > { %v5077_v31 = vpop.f32.mrf.mxu2 }
 0x3b9   : > { %v5078_v38 = vadd.f32 %v5077_v31, %v5054_v51 }
 0x3bb   : > { %v5100_v58 = vadd.f32 %v5099_v20, %v5078_v38 }
 0x3bd   : > { %v7394_v40 = vadd.f32 %v5100_v58, %v4776_v43 }
 0x3be   : > { %v5186_v2 = vpop.f32.mrf.mxu1  ;;  %v5234_v0 = vpop.f32.mrf.mxu3 }
 0x3bf   : > { %v5258_v3 = vpop.f32.mrf.mxu0  ;;  %v5187_v22 = vadd.f32 %v5186_v2, %v5160_v41 }
 0x3c0   : > { %v5210_v5 = vpop.f32.mrf.mxu2 }
 0x3c1   : > { %v5211_v14 = vadd.f32 %v5210_v5, %v5187_v22 }
 0x3c3   : > { %v5235_v42 = vadd.f32 %v5234_v0, %v5211_v14 }
 0x3c5   : > { %v5259_v23 = vadd.f32 %v5258_v3, %v5235_v42 }
 0x3c6   : > { %v5280_v10 = vpop.f32.mrf.mxu1  ;;  %v5332_v12 = vpop.f32.mrf.mxu3 }
 0x3c7   : > { %v5356_v63 = vpop.f32.mrf.mxu0  ;;  %v5281_v50 = vadd.f32 %v5280_v10, %v5259_v23 }
 0x3c8   : > { %v5306_v9 = vpop.f32.mrf.mxu2 }
 0x3c9   : > { %v5333_v45 = vadd.f32 %v5332_v12, %v5306_v9  ;;  %v5429_v2 = vadd.f32 %v5281_v50, %v7392_v54  ;;  %v6083_v9 = vld.sshfl [vmem:[#allocation1 + $0x8] sm:$0xff pattern:$0x75316420] }
 0x3cb   : > { %v5357_v36 = vadd.f32 %v5356_v63, %v5333_v45 }
 0x3ce   : > { %v5380_v57 = vpop.f32.mrf.mxu1  ;;  %v5426_v17 = vpop.f32.mrf.mxu3 }
 0x3cf   : > { %v5481_v55 = vpop.f32.mrf.mxu0  ;;  %v5381_v27 = vadd.f32 %v5380_v57, %v5357_v36 }
 0x3d0   : > { %v5404_v56 = vpop.f32.mrf.mxu2 }
 0x3d1   : > { %v5405_v47 = vadd.f32 %v5404_v56, %v5381_v27 }
 0x3d3   : > { %v5427_v1 = vadd.f32 %v5426_v17, %v5405_v47 }
 0x3d5   : > { %v5430_v0 = vadd.f32 %v5427_v1, %v7394_v40 }
 0x3d6   : > { %v5507_v30 = vpop.f32.mrf.mxu1  ;;  %v5555_v52 = vpop.f32.mrf.mxu3 }
 0x3d7   : > { %v5579_v13 = vpop.f32.mrf.mxu0  ;;  %v5508_v18 = vadd.f32 %v5507_v30, %v5481_v55  ;;  %v6082_v55 = vld.sshfl [vmem:[#allocation1] sm:$0xff pattern:$0x75316420] }
 0x3d8   : > { %v5531_v29 = vpop.f32.mrf.mxu2 }
 0x3d9   : > { %v5532_v25 = vadd.f32 %v5531_v29, %v5508_v18 }
 0x3db   : > { %v5556_v19 = vadd.f32 %v5555_v52, %v5532_v25 }
 0x3dd   : > { %v5580_v28 = vadd.f32 %v5579_v13, %v5556_v19 }
 0x3de   : > { %v5601_v62 = vpop.f32.mrf.mxu1  ;;  %v5653_v53 = vpop.f32.mrf.mxu3 }
 0x3df   : > { %v5677_v46 = vpop.f32.mrf.mxu0  ;;  %v5602_v51 = vadd.f32 %v5601_v62, %v5580_v28 }
 0x3e0   : > { %v5627_v8 = vpop.f32.mrf.mxu2 }
 0x3e1   : > { %v5654_v60 = vadd.f32 %v5653_v53, %v5627_v8  ;;  %v5750_v10 = vadd.f32 %v5602_v51, %v5429_v2 }
 0x3e3   : > { %v5678_v32 = vadd.f32 %v5677_v46, %v5654_v60 }
 0x3e6   : > { %v5701_v61 = vpop.f32.mrf.mxu1  ;;  %v5747_v4 = vpop.f32.mrf.mxu3 }
 0x3e7   : > { %v5808_v34 = vpop.f32.mrf.mxu0  ;;  %v5702_v24 = vadd.f32 %v5701_v61, %v5678_v32 }
 0x3e8   : > { %v5725_v59 = vpop.f32.mrf.mxu2 }
 0x3e9   : > { %v5726_v37 = vadd.f32 %v5725_v59, %v5702_v24 }
 0x3eb   : > { %v5748_v41 = vadd.f32 %v5747_v4, %v5726_v37 }
 0x3ed   : > { %v5751_v12 = vadd.f32 %v5748_v41, %v5430_v0 }
 0x3ee   : > { %v5834_v39 = vpop.f32.mrf.mxu1  ;;  %v5882_v35 = vpop.f32.mrf.mxu3 }
 0x3ef   : > { %v5906_v7 = vpop.f32.mrf.mxu0  ;;  %v5835_v26 = vadd.f32 %v5834_v39, %v5808_v34 }
 0x3f0   : > { %v5858_v11 = vpop.f32.mrf.mxu2 }
 0x3f1   : > { %v5859_v43 = vadd.f32 %v5858_v11, %v5835_v26 }
 0x3f3   : > { %v5883_v6 = vadd.f32 %v5882_v35, %v5859_v43 }
 0x3f5   : > { %v5907_v49 = vadd.f32 %v5906_v7, %v5883_v6 }
 0x3f6   : > { %v5928_v44 = vpop.f32.mrf.mxu1  ;;  %v5980_v15 = vpop.f32.mrf.mxu3 }
 0x3f7   : > { %v6004_v21 = vpop.f32.mrf.mxu0  ;;  %v5929_v3 = vadd.f32 %v5928_v44, %v5907_v49 }
 0x3f8   : > { %v5954_v48 = vpop.f32.mrf.mxu2 }
 0x3f9   : > { %v5981_v16 = vadd.f32 %v5980_v15, %v5954_v48  ;;  %v6077_v57 = vadd.f32 %v5929_v3, %v5750_v10 }
 0x3fb   : > { %v6005_v33 = vadd.f32 %v6004_v21, %v5981_v16  ;;  %v6086_v40 = vadd.f32 %v6082_v55, %v6077_v57 }
 0x3fe   : > { %v6028_v20 = vpop.f32.mrf.mxu1  ;;  %v6074_v58 = vpop.f32.mrf.mxu3 }
 0x3ff   : > { %v6029_v31 = vadd.f32 %v6028_v20, %v6005_v33 }
 0x400   : > { %v6052_v38 = vpop.f32.mrf.mxu2 }
 0x401   : > { %v6053_v5 = vadd.f32 %v6052_v38, %v6029_v31 }
 0x403   : > { %v6075_v63 = vadd.f32 %v6074_v58, %v6053_v5 }
 0x405   : > { %v6078_v17 = vadd.f32 %v6075_v63, %v5751_v12 }
 0x407   : > { %v6087_v54 = vadd.f32 %v6083_v9, %v6078_v17 }
 0x409   : > { %v6090_v56 = vrot.slane %v6087_v54, 4 }
 0x40b   : > { %v6091_v30 = vsel %vm286_vm5, %v6086_v40, %v6090_v56 }
 0x40c   : > { %6093 = vst [vmem:[%s191_s21] sm:$0xff] %v6091_v30 }
 0x40d   : > { %6275 = shalt.err (!%p6272_p3)
}
 0x40e   : > { %6200 = dma.vmem_to_hbm [thread:$0]  (%p6387_p5), %s6109_s28, 128, %s6111_s6, %s6095_s3  }
 0x40f PF: > { %p6206_p4 = scmp.ge.s32.totalorder %s6310_s20, 2  ;;  %s6122_s30 = sand.u32 1, %s6298_s17  }
 0x410   : > { %s6123_s5 = scalar_lea.sflag [#allocation5], %s6122_s30 }
 0x411   : > { %p6203_p7 = pnand %p6206_p4, %p6391_p6 }
 0x413   : > { %p6204_p8 = pneg %p6203_p7 }
 0x415   : > { %6293 = dma.done.wait (%p6204_p8), %s6123_s5, 128  }
 0x416   : > { %6295 = vsyncadd (%p6204_p8), %s6123_s5, 4294967168  ;;  %p15_p9 = scmp.ge.s32.totalorder %s6374_s22, 4   ;;  %s7523_s17 = smov %s6302_s18 }
 0x417   : > { %s7524_s18 = smov %s6306_s19  ;;  %s7525_s19 = smov %s6385_s25 }
 0x418   : > { %s7526_s20 = smov %s6374_s22  ;;  %17 = sbr.rel (!%p15_p9) target bundleno = 5 (0x5), region = 103 }
 0x41d   :  { %6129 = vsyncpa [#allocation5], 1 }
 0x41e   :  { %6131 = vsyncpa [#allocation5 + $0x1], 1 }

</bundles_post_ra>
